<compile_context>
chip_gen: v7x
topology: tpu7x:2x2x1
jax: 0.10.0
libtpu: 0.0.40
codegen_flags: <defaults>
</compile_context>

<pallas_src>
import functools

import jax
import jax.numpy as jnp
from jax import lax
from jax.experimental import pallas as pl
from jax.experimental.pallas import tpu as pltpu

jax.config.update("jax_default_matmul_precision", "highest")

VOCAB_SIZE = 30   # len(string.ascii_lowercase + '-' + ' ' + "'" + '!')
VOCAB_PAD = 128   # lane-dense padded vocab axis
DROPOUT_P = 0.3


def char_rnn_kernel(v,                # static: true vocab size (partial-bound)
                    x_ref,            # VMEM (S, Din+1)   [sexy|name | 1]
                    h0_ref,           # VMEM (1, H+1)     [h0 | 1]
                    wih_ref,          # VMEM (Din+1, 3H)  [W_ih^T ; b_ih]
                    whh_ref,          # VMEM (H+1, 3H)    [W_hh^T ; b_hh]
                    wlin_ref,         # VMEM (H+1, VP)    [W_lin^T ; b_lin], padded
                    mask_ref,         # VMEM (S, VP)      dropout mask, pre-scaled 1/0.7
                    probs_ref,        # out  (S, VP)      softmax probs (padded)
                    hout_ref):        # out  (1, H)       final hidden
    S = x_ref.shape[0]
    H = hout_ref.shape[1]
    VP = probs_ref.shape[1]

    # ---- batched input projection; b_ih folded via the appended ones column ----
    xw = jnp.dot(x_ref[...], wih_ref[...],
                 preferred_element_type=jnp.float32)                   # (S, 3H)

    whh = whh_ref[...]                                                  # (H+1, 3H)
    one = jnp.ones((1, 1), jnp.float32)

    # ---- serial GRU recurrence, fully unrolled; one (1,H+1)x(H+1,3H) MXU matmul/step ----
    h_aug = h0_ref[...]                                                 # (1, H+1)
    hs = []
    for t in range(S):
        hw = jnp.dot(h_aug, whh, preferred_element_type=jnp.float32)   # (1,3H) incl. b_hh
        xw_t = xw[t:t + 1, :]                                           # (1, 3H)
        g = xw_t + hw                                                   # full-width add
        rz = jax.nn.sigmoid(g[:, :2 * H])                               # one sigmoid for r,z
        r = rz[:, :H]
        z = rz[:, H:2 * H]
        n = jnp.tanh(xw_t[:, 2 * H:] + r * hw[:, 2 * H:])               # b_hn inside r*( )
        h = (1.0 - z) * n + z * h_aug[:, :H]                            # (1, H)
        hs.append(h)
        h_aug = jnp.concatenate([h, one], axis=1)                       # re-pin ones lane

    hout_ref[...] = hs[-1]

    # ---- batched epilogue: Linear (bias folded) -> dropout -> masked softmax ----
    h_all = jnp.concatenate(hs, axis=0)                                 # (S, H)
    h_all_aug = jnp.concatenate([h_all, jnp.ones((S, 1), jnp.float32)], axis=1)
    logits = jnp.dot(h_all_aug, wlin_ref[...],
                     preferred_element_type=jnp.float32)                # (S, VP)

    dropped = logits * mask_ref[...]                                    # mask already scaled

    lane = lax.broadcasted_iota(jnp.int32, (S, VP), 1)
    masked = jnp.where(lane < v, dropped, jnp.float32(-1e30))

    m = jnp.max(masked, axis=-1, keepdims=True)
    e = jnp.exp(masked - m)
    denom = jnp.sum(e, axis=-1, keepdims=True)
    probs_ref[...] = e / denom


def init_params(key, vocab_size, embedding_dim, hidden_dim):
    """Deterministic synthetic parameters with PyTorch-like shapes/init scale."""
    din = embedding_dim + 2
    ks = jax.random.split(key, 6)
    s = 1.0 / float(hidden_dim) ** 0.5
    u = lambda k, shape: jax.random.uniform(k, shape, jnp.float32, -s, s)
    return {
        "w_ih": u(ks[0], (3 * hidden_dim, din)),         # GRU weight_ih_l0 (r,z,n)
        "w_hh": u(ks[1], (3 * hidden_dim, hidden_dim)),  # GRU weight_hh_l0
        "b_ih": u(ks[2], (3 * hidden_dim,)),
        "b_hh": u(ks[3], (3 * hidden_dim,)),
        "w_lin": u(ks[4], (vocab_size, hidden_dim)),     # nn.Linear weight
        "b_lin": u(ks[5], (vocab_size,)),
    }


def prepare_slabs(params, vocab_pad=VOCAB_PAD):
    """One-time parameter slab packing (hoisted out of the per-call path)."""
    H = params["w_hh"].shape[1]
    V = params["w_lin"].shape[0]
    w_ih_aug = jnp.concatenate(
        [params["w_ih"].T.astype(jnp.float32),
         params["b_ih"].reshape(1, 3 * H).astype(jnp.float32)], axis=0)     # (Din+1, 3H)
    w_hh_aug = jnp.concatenate(
        [params["w_hh"].T.astype(jnp.float32),
         params["b_hh"].reshape(1, 3 * H).astype(jnp.float32)], axis=0)     # (H+1, 3H)
    w_lin_aug = jnp.zeros((H + 1, vocab_pad), jnp.float32)
    w_lin_aug = w_lin_aug.at[:H, :V].set(params["w_lin"].T.astype(jnp.float32))
    w_lin_aug = w_lin_aug.at[H, :V].set(params["b_lin"].astype(jnp.float32))
    return {"w_ih_aug": w_ih_aug, "w_hh_aug": w_hh_aug, "w_lin_aug": w_lin_aug,
            "hidden_dim": H, "vocab_size": V}


def char_rnn_forward(slabs, sexy, name, *, key, hidden=None):
    """Mirrors CharRNN.forward(sexy, name, hidden)."""
    # sexy: (1, S, E), name: (1, S, 2)  ->  input = cat(dim=2): (1, S, E+2)
    x = jnp.concatenate([sexy, name], axis=2)[0].astype(jnp.float32)    # (S, Din)
    S = x.shape[0]
    H = slabs["hidden_dim"]
    V = slabs["vocab_size"]
    VP = slabs["w_lin_aug"].shape[1]

    k_h, k_d = jax.random.split(key)
    if hidden is None:
        h0 = jax.random.normal(k_h, (1, 1, H), jnp.float32) * 0.01      # randn(1,1,H)*0.01
    else:
        h0 = hidden

    # Dropout keep-mask (training-mode F.dropout semantics), pre-scaled by 1/0.7,
    # zero-padded on the extra vocab lanes.
    keep = jax.random.bernoulli(k_d, 1.0 - DROPOUT_P, (S, V)).astype(jnp.float32)
    mask = jnp.zeros((S, VP), jnp.float32).at[:, :V].set(keep * (1.0 / (1.0 - DROPOUT_P)))

    x_aug = jnp.concatenate([x, jnp.ones((S, 1), jnp.float32)], axis=1)          # (S, Din+1)
    h0_aug = jnp.concatenate([h0.reshape(1, H).astype(jnp.float32),
                              jnp.ones((1, 1), jnp.float32)], axis=1)            # (1, H+1)

    vmem = lambda: pl.BlockSpec(memory_space=pltpu.MemorySpace.VMEM)

    probs_p, h_out = pl.pallas_call(
        functools.partial(char_rnn_kernel, V),
        out_shape=(jax.ShapeDtypeStruct((S, VP), jnp.float32),
                   jax.ShapeDtypeStruct((1, H), jnp.float32)),
        in_specs=[vmem() for _ in range(6)],
        out_specs=(vmem(), vmem()),
    )(x_aug, h0_aug, slabs["w_ih_aug"], slabs["w_hh_aug"], slabs["w_lin_aug"], mask)

    probs = probs_p[:, :V]                      # drop padded vocab lanes
    # output.view(1, -1), hidden (1, 1, H)
    return probs.reshape(1, -1), h_out.reshape(1, 1, H)


if __name__ == "__main__":
    embedding_dim = 8
    hidden_dim = 32
    seq_len = 8

    root = jax.random.PRNGKey(0)
    k_params, k_sexy, k_name, k_hid, k_fwd = jax.random.split(root, 5)

    params = init_params(k_params, VOCAB_SIZE, embedding_dim, hidden_dim)
    slabs = prepare_slabs(params)

    sexy = jax.random.normal(k_sexy, (1, seq_len, embedding_dim), jnp.float32)
    name = jax.random.normal(k_name, (1, seq_len, 2), jnp.float32)
    hidden0 = jax.random.normal(k_hid, (1, 1, hidden_dim), jnp.float32) * 0.01

    out, hidden = char_rnn_forward(slabs, sexy, name, key=k_fwd, hidden=hidden0)
    jax.block_until_ready((out, hidden))

    assert out.shape == (1, seq_len * VOCAB_SIZE)
    assert hidden.shape == (1, 1, hidden_dim)

    # Softmax rows sum to 1 (exact normalization now).
    row_sums = out.reshape(seq_len, VOCAB_SIZE).sum(-1)
    assert jnp.allclose(row_sums, 1.0, atol=1e-5), row_sums

    # ---- pure-JAX reference (GRU + Linear + identical dropout mask + softmax) ----
    x_ref_in = jnp.concatenate([sexy, name], axis=2)[0]
    H = hidden_dim
    w_ih, w_hh = params["w_ih"], params["w_hh"]
    b_ih, b_hh = params["b_ih"], params["b_hh"]

    def ref_step(h, x_t):
        gi = w_ih @ x_t + b_ih
        gh = w_hh @ h + b_hh
        r = jax.nn.sigmoid(gi[:H] + gh[:H])
        z = jax.nn.sigmoid(gi[H:2 * H] + gh[H:2 * H])
        n = jnp.tanh(gi[2 * H:] + r * gh[2 * H:])
        h_new = (1.0 - z) * n + z * h
        return h_new, h_new

    h_ref, h_seq = lax.scan(ref_step, hidden0.reshape(H), x_ref_in)
    assert jnp.allclose(hidden.reshape(H), h_ref, atol=1e-4, rtol=1e-4)

    # Reconstruct the same dropout mask the wrapper drew (same key split).
    _kh, k_d = jax.random.split(k_fwd)
    keep_ref = jax.random.bernoulli(k_d, 1.0 - DROPOUT_P,
                                    (seq_len, VOCAB_SIZE)).astype(jnp.float32)
    logits_ref = h_seq @ params["w_lin"].T + params["b_lin"]
    dropped_ref = logits_ref * keep_ref * (1.0 / (1.0 - DROPOUT_P))
    probs_ref = jax.nn.softmax(dropped_ref, axis=-1)
    assert jnp.allclose(out.reshape(seq_len, VOCAB_SIZE), probs_ref,
                        atol=2e-4, rtol=2e-4)

    print("KERNEL_OK")
</pallas_src>

<mosaic_0001>
module attributes {stable_mosaic.version = 11 : i64} {
  func.func @char_rnn_kernel(%arg0: memref<8x11xf32, #tpu.memory_space<vmem>>, %arg1: memref<1x33xf32, #tpu.memory_space<vmem>>, %arg2: memref<11x96xf32, #tpu.memory_space<vmem>>, %arg3: memref<33x96xf32, #tpu.memory_space<vmem>>, %arg4: memref<33x128xf32, #tpu.memory_space<vmem>>, %arg5: memref<8x128xf32, #tpu.memory_space<vmem>>, %arg6: memref<8x128xf32, #tpu.memory_space<vmem>>, %arg7: memref<1x32xf32, #tpu.memory_space<vmem>>) attributes {dimension_semantics = [], scalar_prefetch = 0 : i64, scratch_operands = 0 : i64, tpu.core_type = #tpu.core_type<tc>} {
    %c0 = arith.constant 0 : index
    %c0_0 = arith.constant 0 : index
    %0 = vector.load %arg0[%c0, %c0_0] : memref<8x11xf32, #tpu.memory_space<vmem>>, vector<8x11xf32>
    %c0_1 = arith.constant 0 : index
    %c0_2 = arith.constant 0 : index
    %1 = vector.load %arg2[%c0_1, %c0_2] : memref<11x96xf32, #tpu.memory_space<vmem>>, vector<11x96xf32>
    %cst = arith.constant dense<0.000000e+00> : vector<8x96xf32>
    %2 = tpu.matmul %0, %1, %cst {dimension_numbers = #tpu.dot_dimension_numbers<[1], [0], [0], [1], [0, 0, 1, 1], [], []>, precision = #tpu.contract_precision<fp32>} : vector<8x11xf32>, vector<11x96xf32>, vector<8x96xf32> -> vector<8x96xf32>
    %c0_3 = arith.constant 0 : index
    %c0_4 = arith.constant 0 : index
    %3 = vector.load %arg3[%c0_3, %c0_4] : memref<33x96xf32, #tpu.memory_space<vmem>>, vector<33x96xf32>
    %cst_5 = arith.constant 1.000000e+00 : f32
    %4 = vector.broadcast %cst_5 : f32 to vector<1x1xf32>
    %c0_6 = arith.constant 0 : index
    %c0_7 = arith.constant 0 : index
    %5 = vector.load %arg1[%c0_6, %c0_7] : memref<1x33xf32, #tpu.memory_space<vmem>>, vector<1x33xf32>
    %cst_8 = arith.constant dense<0.000000e+00> : vector<1x96xf32>
    %6 = tpu.matmul %5, %3, %cst_8 {dimension_numbers = #tpu.dot_dimension_numbers<[1], [0], [0], [1], [0, 0, 1, 1], [], []>, precision = #tpu.contract_precision<fp32>} : vector<1x33xf32>, vector<33x96xf32>, vector<1x96xf32> -> vector<1x96xf32>
    %7 = vector.extract_strided_slice %2 {offsets = [0, 0], sizes = [1, 96], strides = [1, 1]} : vector<8x96xf32> to vector<1x96xf32>
    %8 = arith.addf %7, %6 : vector<1x96xf32>
    %9 = vector.extract_strided_slice %8 {offsets = [0, 0], sizes = [1, 64], strides = [1, 1]} : vector<1x96xf32> to vector<1x64xf32>
    %10 = arith.negf %9 : vector<1x64xf32>
    %11 = math.exp %10 : vector<1x64xf32>
    %cst_9 = arith.constant 1.000000e+00 : f32
    %12 = vector.broadcast %cst_9 : f32 to vector<1x64xf32>
    %13 = arith.addf %12, %11 : vector<1x64xf32>
    %14 = arith.divf %12, %13 : vector<1x64xf32>
    %15 = vector.extract_strided_slice %14 {offsets = [0, 0], sizes = [1, 32], strides = [1, 1]} : vector<1x64xf32> to vector<1x32xf32>
    %16 = vector.extract_strided_slice %14 {offsets = [0, 32], sizes = [1, 32], strides = [1, 1]} : vector<1x64xf32> to vector<1x32xf32>
    %17 = vector.extract_strided_slice %7 {offsets = [0, 64], sizes = [1, 32], strides = [1, 1]} : vector<1x96xf32> to vector<1x32xf32>
    %18 = vector.extract_strided_slice %6 {offsets = [0, 64], sizes = [1, 32], strides = [1, 1]} : vector<1x96xf32> to vector<1x32xf32>
    %19 = arith.mulf %15, %18 : vector<1x32xf32>
    %20 = arith.addf %17, %19 : vector<1x32xf32>
    %21 = math.tanh %20 : vector<1x32xf32>
    %cst_10 = arith.constant 1.000000e+00 : f32
    %22 = vector.broadcast %cst_10 : f32 to vector<1x32xf32>
    %23 = arith.subf %22, %16 : vector<1x32xf32>
    %24 = arith.mulf %23, %21 : vector<1x32xf32>
    %25 = vector.extract_strided_slice %5 {offsets = [0, 0], sizes = [1, 32], strides = [1, 1]} : vector<1x33xf32> to vector<1x32xf32>
    %26 = arith.mulf %16, %25 : vector<1x32xf32>
    %27 = arith.addf %24, %26 : vector<1x32xf32>
    %28 = tpu.concatenate %27, %4 in 1 : vector<1x32xf32>, vector<1x1xf32> -> vector<1x33xf32>
    %cst_11 = arith.constant dense<0.000000e+00> : vector<1x96xf32>
    %29 = tpu.matmul %28, %3, %cst_11 {dimension_numbers = #tpu.dot_dimension_numbers<[1], [0], [0], [1], [0, 0, 1, 1], [], []>, precision = #tpu.contract_precision<fp32>} : vector<1x33xf32>, vector<33x96xf32>, vector<1x96xf32> -> vector<1x96xf32>
    %30 = vector.extract_strided_slice %2 {offsets = [1, 0], sizes = [1, 96], strides = [1, 1]} : vector<8x96xf32> to vector<1x96xf32>
    %31 = arith.addf %30, %29 : vector<1x96xf32>
    %32 = vector.extract_strided_slice %31 {offsets = [0, 0], sizes = [1, 64], strides = [1, 1]} : vector<1x96xf32> to vector<1x64xf32>
    %33 = arith.negf %32 : vector<1x64xf32>
    %34 = math.exp %33 : vector<1x64xf32>
    %cst_12 = arith.constant 1.000000e+00 : f32
    %35 = vector.broadcast %cst_12 : f32 to vector<1x64xf32>
    %36 = arith.addf %35, %34 : vector<1x64xf32>
    %37 = arith.divf %35, %36 : vector<1x64xf32>
    %38 = vector.extract_strided_slice %37 {offsets = [0, 0], sizes = [1, 32], strides = [1, 1]} : vector<1x64xf32> to vector<1x32xf32>
    %39 = vector.extract_strided_slice %37 {offsets = [0, 32], sizes = [1, 32], strides = [1, 1]} : vector<1x64xf32> to vector<1x32xf32>
    %40 = vector.extract_strided_slice %30 {offsets = [0, 64], sizes = [1, 32], strides = [1, 1]} : vector<1x96xf32> to vector<1x32xf32>
    %41 = vector.extract_strided_slice %29 {offsets = [0, 64], sizes = [1, 32], strides = [1, 1]} : vector<1x96xf32> to vector<1x32xf32>
    %42 = arith.mulf %38, %41 : vector<1x32xf32>
    %43 = arith.addf %40, %42 : vector<1x32xf32>
    %44 = math.tanh %43 : vector<1x32xf32>
    %cst_13 = arith.constant 1.000000e+00 : f32
    %45 = vector.broadcast %cst_13 : f32 to vector<1x32xf32>
    %46 = arith.subf %45, %39 : vector<1x32xf32>
    %47 = arith.mulf %46, %44 : vector<1x32xf32>
    %48 = vector.extract_strided_slice %28 {offsets = [0, 0], sizes = [1, 32], strides = [1, 1]} : vector<1x33xf32> to vector<1x32xf32>
    %49 = arith.mulf %39, %48 : vector<1x32xf32>
    %50 = arith.addf %47, %49 : vector<1x32xf32>
    %51 = tpu.concatenate %50, %4 in 1 : vector<1x32xf32>, vector<1x1xf32> -> vector<1x33xf32>
    %cst_14 = arith.constant dense<0.000000e+00> : vector<1x96xf32>
    %52 = tpu.matmul %51, %3, %cst_14 {dimension_numbers = #tpu.dot_dimension_numbers<[1], [0], [0], [1], [0, 0, 1, 1], [], []>, precision = #tpu.contract_precision<fp32>} : vector<1x33xf32>, vector<33x96xf32>, vector<1x96xf32> -> vector<1x96xf32>
    %53 = vector.extract_strided_slice %2 {offsets = [2, 0], sizes = [1, 96], strides = [1, 1]} : vector<8x96xf32> to vector<1x96xf32>
    %54 = arith.addf %53, %52 : vector<1x96xf32>
    %55 = vector.extract_strided_slice %54 {offsets = [0, 0], sizes = [1, 64], strides = [1, 1]} : vector<1x96xf32> to vector<1x64xf32>
    %56 = arith.negf %55 : vector<1x64xf32>
    %57 = math.exp %56 : vector<1x64xf32>
    %cst_15 = arith.constant 1.000000e+00 : f32
    %58 = vector.broadcast %cst_15 : f32 to vector<1x64xf32>
    %59 = arith.addf %58, %57 : vector<1x64xf32>
    %60 = arith.divf %58, %59 : vector<1x64xf32>
    %61 = vector.extract_strided_slice %60 {offsets = [0, 0], sizes = [1, 32], strides = [1, 1]} : vector<1x64xf32> to vector<1x32xf32>
    %62 = vector.extract_strided_slice %60 {offsets = [0, 32], sizes = [1, 32], strides = [1, 1]} : vector<1x64xf32> to vector<1x32xf32>
    %63 = vector.extract_strided_slice %53 {offsets = [0, 64], sizes = [1, 32], strides = [1, 1]} : vector<1x96xf32> to vector<1x32xf32>
    %64 = vector.extract_strided_slice %52 {offsets = [0, 64], sizes = [1, 32], strides = [1, 1]} : vector<1x96xf32> to vector<1x32xf32>
    %65 = arith.mulf %61, %64 : vector<1x32xf32>
    %66 = arith.addf %63, %65 : vector<1x32xf32>
    %67 = math.tanh %66 : vector<1x32xf32>
    %cst_16 = arith.constant 1.000000e+00 : f32
    %68 = vector.broadcast %cst_16 : f32 to vector<1x32xf32>
    %69 = arith.subf %68, %62 : vector<1x32xf32>
    %70 = arith.mulf %69, %67 : vector<1x32xf32>
    %71 = vector.extract_strided_slice %51 {offsets = [0, 0], sizes = [1, 32], strides = [1, 1]} : vector<1x33xf32> to vector<1x32xf32>
    %72 = arith.mulf %62, %71 : vector<1x32xf32>
    %73 = arith.addf %70, %72 : vector<1x32xf32>
    %74 = tpu.concatenate %73, %4 in 1 : vector<1x32xf32>, vector<1x1xf32> -> vector<1x33xf32>
    %cst_17 = arith.constant dense<0.000000e+00> : vector<1x96xf32>
    %75 = tpu.matmul %74, %3, %cst_17 {dimension_numbers = #tpu.dot_dimension_numbers<[1], [0], [0], [1], [0, 0, 1, 1], [], []>, precision = #tpu.contract_precision<fp32>} : vector<1x33xf32>, vector<33x96xf32>, vector<1x96xf32> -> vector<1x96xf32>
    %76 = vector.extract_strided_slice %2 {offsets = [3, 0], sizes = [1, 96], strides = [1, 1]} : vector<8x96xf32> to vector<1x96xf32>
    %77 = arith.addf %76, %75 : vector<1x96xf32>
    %78 = vector.extract_strided_slice %77 {offsets = [0, 0], sizes = [1, 64], strides = [1, 1]} : vector<1x96xf32> to vector<1x64xf32>
    %79 = arith.negf %78 : vector<1x64xf32>
    %80 = math.exp %79 : vector<1x64xf32>
    %cst_18 = arith.constant 1.000000e+00 : f32
    %81 = vector.broadcast %cst_18 : f32 to vector<1x64xf32>
    %82 = arith.addf %81, %80 : vector<1x64xf32>
    %83 = arith.divf %81, %82 : vector<1x64xf32>
    %84 = vector.extract_strided_slice %83 {offsets = [0, 0], sizes = [1, 32], strides = [1, 1]} : vector<1x64xf32> to vector<1x32xf32>
    %85 = vector.extract_strided_slice %83 {offsets = [0, 32], sizes = [1, 32], strides = [1, 1]} : vector<1x64xf32> to vector<1x32xf32>
    %86 = vector.extract_strided_slice %76 {offsets = [0, 64], sizes = [1, 32], strides = [1, 1]} : vector<1x96xf32> to vector<1x32xf32>
    %87 = vector.extract_strided_slice %75 {offsets = [0, 64], sizes = [1, 32], strides = [1, 1]} : vector<1x96xf32> to vector<1x32xf32>
    %88 = arith.mulf %84, %87 : vector<1x32xf32>
    %89 = arith.addf %86, %88 : vector<1x32xf32>
    %90 = math.tanh %89 : vector<1x32xf32>
    %cst_19 = arith.constant 1.000000e+00 : f32
    %91 = vector.broadcast %cst_19 : f32 to vector<1x32xf32>
    %92 = arith.subf %91, %85 : vector<1x32xf32>
    %93 = arith.mulf %92, %90 : vector<1x32xf32>
    %94 = vector.extract_strided_slice %74 {offsets = [0, 0], sizes = [1, 32], strides = [1, 1]} : vector<1x33xf32> to vector<1x32xf32>
    %95 = arith.mulf %85, %94 : vector<1x32xf32>
    %96 = arith.addf %93, %95 : vector<1x32xf32>
    %97 = tpu.concatenate %96, %4 in 1 : vector<1x32xf32>, vector<1x1xf32> -> vector<1x33xf32>
    %cst_20 = arith.constant dense<0.000000e+00> : vector<1x96xf32>
    %98 = tpu.matmul %97, %3, %cst_20 {dimension_numbers = #tpu.dot_dimension_numbers<[1], [0], [0], [1], [0, 0, 1, 1], [], []>, precision = #tpu.contract_precision<fp32>} : vector<1x33xf32>, vector<33x96xf32>, vector<1x96xf32> -> vector<1x96xf32>
    %99 = vector.extract_strided_slice %2 {offsets = [4, 0], sizes = [1, 96], strides = [1, 1]} : vector<8x96xf32> to vector<1x96xf32>
    %100 = arith.addf %99, %98 : vector<1x96xf32>
    %101 = vector.extract_strided_slice %100 {offsets = [0, 0], sizes = [1, 64], strides = [1, 1]} : vector<1x96xf32> to vector<1x64xf32>
    %102 = arith.negf %101 : vector<1x64xf32>
    %103 = math.exp %102 : vector<1x64xf32>
    %cst_21 = arith.constant 1.000000e+00 : f32
    %104 = vector.broadcast %cst_21 : f32 to vector<1x64xf32>
    %105 = arith.addf %104, %103 : vector<1x64xf32>
    %106 = arith.divf %104, %105 : vector<1x64xf32>
    %107 = vector.extract_strided_slice %106 {offsets = [0, 0], sizes = [1, 32], strides = [1, 1]} : vector<1x64xf32> to vector<1x32xf32>
    %108 = vector.extract_strided_slice %106 {offsets = [0, 32], sizes = [1, 32], strides = [1, 1]} : vector<1x64xf32> to vector<1x32xf32>
    %109 = vector.extract_strided_slice %99 {offsets = [0, 64], sizes = [1, 32], strides = [1, 1]} : vector<1x96xf32> to vector<1x32xf32>
    %110 = vector.extract_strided_slice %98 {offsets = [0, 64], sizes = [1, 32], strides = [1, 1]} : vector<1x96xf32> to vector<1x32xf32>
    %111 = arith.mulf %107, %110 : vector<1x32xf32>
    %112 = arith.addf %109, %111 : vector<1x32xf32>
    %113 = math.tanh %112 : vector<1x32xf32>
    %cst_22 = arith.constant 1.000000e+00 : f32
    %114 = vector.broadcast %cst_22 : f32 to vector<1x32xf32>
    %115 = arith.subf %114, %108 : vector<1x32xf32>
    %116 = arith.mulf %115, %113 : vector<1x32xf32>
    %117 = vector.extract_strided_slice %97 {offsets = [0, 0], sizes = [1, 32], strides = [1, 1]} : vector<1x33xf32> to vector<1x32xf32>
    %118 = arith.mulf %108, %117 : vector<1x32xf32>
    %119 = arith.addf %116, %118 : vector<1x32xf32>
    %120 = tpu.concatenate %119, %4 in 1 : vector<1x32xf32>, vector<1x1xf32> -> vector<1x33xf32>
    %cst_23 = arith.constant dense<0.000000e+00> : vector<1x96xf32>
    %121 = tpu.matmul %120, %3, %cst_23 {dimension_numbers = #tpu.dot_dimension_numbers<[1], [0], [0], [1], [0, 0, 1, 1], [], []>, precision = #tpu.contract_precision<fp32>} : vector<1x33xf32>, vector<33x96xf32>, vector<1x96xf32> -> vector<1x96xf32>
    %122 = vector.extract_strided_slice %2 {offsets = [5, 0], sizes = [1, 96], strides = [1, 1]} : vector<8x96xf32> to vector<1x96xf32>
    %123 = arith.addf %122, %121 : vector<1x96xf32>
    %124 = vector.extract_strided_slice %123 {offsets = [0, 0], sizes = [1, 64], strides = [1, 1]} : vector<1x96xf32> to vector<1x64xf32>
    %125 = arith.negf %124 : vector<1x64xf32>
    %126 = math.exp %125 : vector<1x64xf32>
    %cst_24 = arith.constant 1.000000e+00 : f32
    %127 = vector.broadcast %cst_24 : f32 to vector<1x64xf32>
    %128 = arith.addf %127, %126 : vector<1x64xf32>
    %129 = arith.divf %127, %128 : vector<1x64xf32>
    %130 = vector.extract_strided_slice %129 {offsets = [0, 0], sizes = [1, 32], strides = [1, 1]} : vector<1x64xf32> to vector<1x32xf32>
    %131 = vector.extract_strided_slice %129 {offsets = [0, 32], sizes = [1, 32], strides = [1, 1]} : vector<1x64xf32> to vector<1x32xf32>
    %132 = vector.extract_strided_slice %122 {offsets = [0, 64], sizes = [1, 32], strides = [1, 1]} : vector<1x96xf32> to vector<1x32xf32>
    %133 = vector.extract_strided_slice %121 {offsets = [0, 64], sizes = [1, 32], strides = [1, 1]} : vector<1x96xf32> to vector<1x32xf32>
    %134 = arith.mulf %130, %133 : vector<1x32xf32>
    %135 = arith.addf %132, %134 : vector<1x32xf32>
    %136 = math.tanh %135 : vector<1x32xf32>
    %cst_25 = arith.constant 1.000000e+00 : f32
    %137 = vector.broadcast %cst_25 : f32 to vector<1x32xf32>
    %138 = arith.subf %137, %131 : vector<1x32xf32>
    %139 = arith.mulf %138, %136 : vector<1x32xf32>
    %140 = vector.extract_strided_slice %120 {offsets = [0, 0], sizes = [1, 32], strides = [1, 1]} : vector<1x33xf32> to vector<1x32xf32>
    %141 = arith.mulf %131, %140 : vector<1x32xf32>
    %142 = arith.addf %139, %141 : vector<1x32xf32>
    %143 = tpu.concatenate %142, %4 in 1 : vector<1x32xf32>, vector<1x1xf32> -> vector<1x33xf32>
    %cst_26 = arith.constant dense<0.000000e+00> : vector<1x96xf32>
    %144 = tpu.matmul %143, %3, %cst_26 {dimension_numbers = #tpu.dot_dimension_numbers<[1], [0], [0], [1], [0, 0, 1, 1], [], []>, precision = #tpu.contract_precision<fp32>} : vector<1x33xf32>, vector<33x96xf32>, vector<1x96xf32> -> vector<1x96xf32>
    %145 = vector.extract_strided_slice %2 {offsets = [6, 0], sizes = [1, 96], strides = [1, 1]} : vector<8x96xf32> to vector<1x96xf32>
    %146 = arith.addf %145, %144 : vector<1x96xf32>
    %147 = vector.extract_strided_slice %146 {offsets = [0, 0], sizes = [1, 64], strides = [1, 1]} : vector<1x96xf32> to vector<1x64xf32>
    %148 = arith.negf %147 : vector<1x64xf32>
    %149 = math.exp %148 : vector<1x64xf32>
    %cst_27 = arith.constant 1.000000e+00 : f32
    %150 = vector.broadcast %cst_27 : f32 to vector<1x64xf32>
    %151 = arith.addf %150, %149 : vector<1x64xf32>
    %152 = arith.divf %150, %151 : vector<1x64xf32>
    %153 = vector.extract_strided_slice %152 {offsets = [0, 0], sizes = [1, 32], strides = [1, 1]} : vector<1x64xf32> to vector<1x32xf32>
    %154 = vector.extract_strided_slice %152 {offsets = [0, 32], sizes = [1, 32], strides = [1, 1]} : vector<1x64xf32> to vector<1x32xf32>
    %155 = vector.extract_strided_slice %145 {offsets = [0, 64], sizes = [1, 32], strides = [1, 1]} : vector<1x96xf32> to vector<1x32xf32>
    %156 = vector.extract_strided_slice %144 {offsets = [0, 64], sizes = [1, 32], strides = [1, 1]} : vector<1x96xf32> to vector<1x32xf32>
    %157 = arith.mulf %153, %156 : vector<1x32xf32>
    %158 = arith.addf %155, %157 : vector<1x32xf32>
    %159 = math.tanh %158 : vector<1x32xf32>
    %cst_28 = arith.constant 1.000000e+00 : f32
    %160 = vector.broadcast %cst_28 : f32 to vector<1x32xf32>
    %161 = arith.subf %160, %154 : vector<1x32xf32>
    %162 = arith.mulf %161, %159 : vector<1x32xf32>
    %163 = vector.extract_strided_slice %143 {offsets = [0, 0], sizes = [1, 32], strides = [1, 1]} : vector<1x33xf32> to vector<1x32xf32>
    %164 = arith.mulf %154, %163 : vector<1x32xf32>
    %165 = arith.addf %162, %164 : vector<1x32xf32>
    %166 = tpu.concatenate %165, %4 in 1 : vector<1x32xf32>, vector<1x1xf32> -> vector<1x33xf32>
    %cst_29 = arith.constant dense<0.000000e+00> : vector<1x96xf32>
    %167 = tpu.matmul %166, %3, %cst_29 {dimension_numbers = #tpu.dot_dimension_numbers<[1], [0], [0], [1], [0, 0, 1, 1], [], []>, precision = #tpu.contract_precision<fp32>} : vector<1x33xf32>, vector<33x96xf32>, vector<1x96xf32> -> vector<1x96xf32>
    %168 = vector.extract_strided_slice %2 {offsets = [7, 0], sizes = [1, 96], strides = [1, 1]} : vector<8x96xf32> to vector<1x96xf32>
    %169 = arith.addf %168, %167 : vector<1x96xf32>
    %170 = vector.extract_strided_slice %169 {offsets = [0, 0], sizes = [1, 64], strides = [1, 1]} : vector<1x96xf32> to vector<1x64xf32>
    %171 = arith.negf %170 : vector<1x64xf32>
    %172 = math.exp %171 : vector<1x64xf32>
    %cst_30 = arith.constant 1.000000e+00 : f32
    %173 = vector.broadcast %cst_30 : f32 to vector<1x64xf32>
    %174 = arith.addf %173, %172 : vector<1x64xf32>
    %175 = arith.divf %173, %174 : vector<1x64xf32>
    %176 = vector.extract_strided_slice %175 {offsets = [0, 0], sizes = [1, 32], strides = [1, 1]} : vector<1x64xf32> to vector<1x32xf32>
    %177 = vector.extract_strided_slice %175 {offsets = [0, 32], sizes = [1, 32], strides = [1, 1]} : vector<1x64xf32> to vector<1x32xf32>
    %178 = vector.extract_strided_slice %168 {offsets = [0, 64], sizes = [1, 32], strides = [1, 1]} : vector<1x96xf32> to vector<1x32xf32>
    %179 = vector.extract_strided_slice %167 {offsets = [0, 64], sizes = [1, 32], strides = [1, 1]} : vector<1x96xf32> to vector<1x32xf32>
    %180 = arith.mulf %176, %179 : vector<1x32xf32>
    %181 = arith.addf %178, %180 : vector<1x32xf32>
    %182 = math.tanh %181 : vector<1x32xf32>
    %cst_31 = arith.constant 1.000000e+00 : f32
    %183 = vector.broadcast %cst_31 : f32 to vector<1x32xf32>
    %184 = arith.subf %183, %177 : vector<1x32xf32>
    %185 = arith.mulf %184, %182 : vector<1x32xf32>
    %186 = vector.extract_strided_slice %166 {offsets = [0, 0], sizes = [1, 32], strides = [1, 1]} : vector<1x33xf32> to vector<1x32xf32>
    %187 = arith.mulf %177, %186 : vector<1x32xf32>
    %188 = arith.addf %185, %187 : vector<1x32xf32>
    %c0_32 = arith.constant 0 : index
    %c0_33 = arith.constant 0 : index
    %189 = vector.load %arg7[%c0_32, %c0_33] : memref<1x32xf32, #tpu.memory_space<vmem>>, vector<1x32xf32>
    tpu.vector_store %arg7[%c0_32, %c0_33], %188 {strides = array<i32>} : memref<1x32xf32, #tpu.memory_space<vmem>>, vector<1x32xf32>,
    %190 = tpu.concatenate %27, %50, %73, %96, %119, %142, %165, %188 in 0 : vector<1x32xf32>, vector<1x32xf32>, vector<1x32xf32>, vector<1x32xf32>, vector<1x32xf32>, vector<1x32xf32>, vector<1x32xf32>, vector<1x32xf32> -> vector<8x32xf32>
    %cst_34 = arith.constant 1.000000e+00 : f32
    %191 = vector.broadcast %cst_34 : f32 to vector<8x1xf32>
    %192 = tpu.concatenate %190, %191 in 1 : vector<8x32xf32>, vector<8x1xf32> -> vector<8x33xf32>
    %c0_35 = arith.constant 0 : index
    %c0_36 = arith.constant 0 : index
    %193 = vector.load %arg4[%c0_35, %c0_36] : memref<33x128xf32, #tpu.memory_space<vmem>>, vector<33x128xf32>
    %cst_37 = arith.constant dense<0.000000e+00> : vector<8x128xf32>
    %194 = tpu.matmul %192, %193, %cst_37 {dimension_numbers = #tpu.dot_dimension_numbers<[1], [0], [0], [1], [0, 0, 1, 1], [], []>, precision = #tpu.contract_precision<fp32>} : vector<8x33xf32>, vector<33x128xf32>, vector<8x128xf32> -> vector<8x128xf32>
    %c0_38 = arith.constant 0 : index
    %c0_39 = arith.constant 0 : index
    %195 = vector.load %arg5[%c0_38, %c0_39] : memref<8x128xf32, #tpu.memory_space<vmem>>, vector<8x128xf32>
    %196 = arith.mulf %194, %195 : vector<8x128xf32>
    %197 = tpu.iota {dimensions = array<i32: 1>} : vector<8x128xi32>
    %c30_i32 = arith.constant 30 : i32
    %198 = vector.broadcast %c30_i32 : i32 to vector<8x128xi32>
    %199 = arith.cmpi slt, %197, %198 : vector<8x128xi32>
    %cst_40 = arith.constant -1.000000e+30 : f32
    %200 = vector.broadcast %cst_40 : f32 to vector<8x128xf32>
    %201 = arith.select %199, %196, %200 : vector<8x128xi1>, vector<8x128xf32>
    %cst_41 = arith.constant dense<0xFF800000> : vector<8xf32>
    %202 = vector.multi_reduction <maximumf>, %201, %cst_41 [1] : vector<8x128xf32> to vector<8xf32>
    %203 = vector.shape_cast %202 : vector<8xf32> to vector<8x1xf32>
    %204 = vector.broadcast %203 : vector<8x1xf32> to vector<8x128xf32>
    %205 = arith.subf %201, %204 : vector<8x128xf32>
    %206 = math.exp %205 : vector<8x128xf32>
    %cst_42 = arith.constant dense<0.000000e+00> : vector<8xf32>
    %207 = vector.multi_reduction <add>, %206, %cst_42 [1] : vector<8x128xf32> to vector<8xf32>
    %208 = vector.shape_cast %207 : vector<8xf32> to vector<8x1xf32>
    %209 = vector.broadcast %208 : vector<8x1xf32> to vector<8x128xf32>
    %210 = arith.divf %206, %209 : vector<8x128xf32>
    %c0_43 = arith.constant 0 : index
    %c0_44 = arith.constant 0 : index
    %211 = vector.load %arg6[%c0_43, %c0_44] : memref<8x128xf32, #tpu.memory_space<vmem>>, vector<8x128xf32>
    tpu.vector_store %arg6[%c0_43, %c0_44], %210 {strides = array<i32>} : memref<8x128xf32, #tpu.memory_space<vmem>>, vector<8x128xf32>,
    return
  }
}

</mosaic_0001>

<bundles_post_ra>
// kernel: tpu_custom_call.1
= control target key start
LH: loop header
LB: loop body
LE: loop exit
PB: predicated region body
PF: predicated region fallthrough
CT: control target
= control target key end

     0   :  { %13 = vsyncpa [#allocation3], 0  ;;  %s8016_s0 = inlined_call_operand.hbm [shape: f32[8,11], index: 0, kind: input, shape index: {}]   ;;  %s8017_s1 = inlined_call_operand.vmem [shape: f32[1,33], index: 1, kind: input, shape index: {}]   ;;  %s8018_s2 = inlined_call_operand.hbm [shape: f32[11,96], index: 2, kind: input, shape index: {}]   ;;  %s8019_s3 = inlined_call_operand.hbm [shape: f32[33,96], index: 3, kind: input, shape index: {}]   ;;  %s8020_s4 = inlined_call_operand.hbm [shape: f32[33,128], index: 4, kind: input, shape index: {}]   ;;  %s8021_s5 = inlined_call_operand.vmem [shape: f32[8,128], index: 5, kind: input, shape index: {}]   ;;  %s8022_s6 = inlined_call_operand.hbm [shape: f32[8,128], index: 6, kind: output, shape index: {0}]   ;;  %s8023_s7 = inlined_call_operand.hbm [shape: f32[1,32], index: 7, kind: output, shape index: {1}]  }
   0x1   :  { %14 = vsyncpa [#allocation6], 0 }
   0x2   :  { %15 = vsyncpa [#allocation9], 0 }
   0x3   :  { %16 = vsyncpa [#allocation4], 0 }
   0x4   :  { %17 = vsyncpa [#allocation12], 0  ;;  %s7190_s24 = smov [#allocation5]   ;;  %s7048_s28 = scalar_lea.hbm %s8018_s2, 256 }
   0x5   :  { %s35_s25 = sshll.u32 %s7190_s24, 4  ;;  %p7049_p0 = scmp.ne.s32.totalorder %s8018_s2, %s7048_s28  ;;  %s36_s25 = int_to_ptr.vmem [resolvable:$true] %s35_s25 }
   0x6   :  { %p7052_p1 = scmp.lt.u32.totalorder %s7048_s28, %s8018_s2 }
   0x8   :  { %p7054_p2 = pnand %p7052_p1, %p7049_p0 }
   0xa   :  { %7057 = shalt.err (!%p7054_p2)
}
   0xb   :  { %s7058_s10 = scalar_lea.vmem %s36_s25, 256  ;;  %p7063_p4 = scmp.lt.s32.totalorder %s36_s25, %s36_s25 }
   0xc   :  { %p7059_p3 = scmp.ne.s32.totalorder %s36_s25, %s7058_s10  ;;  %p7064_p5 = scmp.lt.s32.totalorder %s7058_s10, %s7058_s10 }
   0xe   :  { %p7065_p6 = por %p7064_p5, %p7063_p4 }
  0x10   :  { %p7066_p7 = pnand %p7065_p6, %p7059_p3 }
  0x12   :  { %7069 = shalt.err (!%p7066_p7)
}
  0x13   :  { %s7191_s11 = smov 128   ;;  %s7192_s12 = smov 8  }
  0x14   :  { %41 = dma.hbm_to_vmem [thread:$0]  %s8018_s2, 256, %s36_s25, [#allocation6], %s7191_s11, %s7191_s11, %s7192_s12  }
  0x15   :  { %s7193_s15 = smov [#allocation2]   ;;  %s7194_s17 = smov [#allocation7]  }
  0x16   :  { %s24_s16 = sshll.u32 %s7193_s15, 4  ;;  %s47_s18 = sshll.u32 %s7194_s17, 4  ;;  %s25_s16 = int_to_ptr.vmem [resolvable:$true] %s24_s16  ;;  %s48_s18 = int_to_ptr.vmem [resolvable:$true] %s47_s18 }
  0x17   :  { %s7070_s21 = scalar_lea.hbm %s8016_s0, 128 }
  0x18   :  { %p7071_p8 = scmp.ne.s32.totalorder %s8016_s0, %s7070_s21  ;;  %p7074_p9 = scmp.lt.u32.totalorder %s7070_s21, %s8016_s0 }
  0x1a   :  { %p7076_p10 = pnand %p7074_p9, %p7071_p8 }
  0x1c   :  { %7079 = shalt.err (!%p7076_p10)
}
  0x1d   :  { %s7080_s2 = scalar_lea.vmem %s25_s16, 128  ;;  %p7085_p12 = scmp.lt.s32.totalorder %s25_s16, %s25_s16 }
  0x1e   :  { %p7081_p11 = scmp.ne.s32.totalorder %s25_s16, %s7080_s2  ;;  %p7086_p13 = scmp.lt.s32.totalorder %s7080_s2, %s7080_s2 }
  0x20   :  { %p7087_p0 = por %p7086_p13, %p7085_p12 }
  0x22   :  { %p7088_p1 = pnand %p7087_p0, %p7081_p11 }
  0x24   :  { %7091 = shalt.err (!%p7088_p1)
}
  0x25   :  { %27 = dma.hbm_to_vmem [thread:$0]  %s8016_s0, 128, %s25_s16, [#allocation3]  }
  0x26   :  { %s7092_s30 = scalar_lea.hbm %s8019_s3, 640 }
  0x27   :  { %p7093_p2 = scmp.ne.s32.totalorder %s8019_s3, %s7092_s30  ;;  %p7096_p3 = scmp.lt.u32.totalorder %s7092_s30, %s8019_s3 }
  0x29   :  { %p7098_p4 = pnand %p7096_p3, %p7093_p2 }
  0x2b   :  { %7101 = shalt.err (!%p7098_p4)
}
  0x2c   :  { %s7102_s14 = scalar_lea.vmem %s48_s18, 640  ;;  %p7107_p6 = scmp.lt.s32.totalorder %s48_s18, %s48_s18 }
  0x2d   :  { %p7103_p5 = scmp.ne.s32.totalorder %s48_s18, %s7102_s14  ;;  %p7108_p7 = scmp.lt.s32.totalorder %s7102_s14, %s7102_s14 }
  0x2f   :  { %p7109_p8 = por %p7108_p7, %p7107_p6 }
  0x31   :  { %p7110_p9 = pnand %p7109_p8, %p7103_p5 }
  0x33   :  { %7113 = shalt.err (!%p7110_p9)
}
  0x34   :  { %53 = dma.hbm_to_vmem [thread:$0]  %s8019_s3, 640, %s48_s18, [#allocation6], %s7191_s11, %s7191_s11, %s7192_s12  }
  0x35   :  { %s7195_s16 = smov [#allocation8]   ;;  %s7114_s21 = scalar_lea.hbm %s8020_s4, 640 }
  0x36   :  { %s59_s17 = sshll.u32 %s7195_s16, 4  ;;  %p7115_p10 = scmp.ne.s32.totalorder %s8020_s4, %s7114_s21  ;;  %s60_s17 = int_to_ptr.vmem [resolvable:$true] %s59_s17 }
  0x37   :  { %p7118_p11 = scmp.lt.u32.totalorder %s7114_s21, %s8020_s4 }
  0x39   :  { %p7120_p12 = pnand %p7118_p11, %p7115_p10 }
  0x3b   :  { %7123 = shalt.err (!%p7120_p12)
}
  0x3c   :  { %s7124_s2 = scalar_lea.vmem %s60_s17, 640  ;;  %p7129_p0 = scmp.lt.s32.totalorder %s60_s17, %s60_s17 }
  0x3d   :  { %p7125_p13 = scmp.ne.s32.totalorder %s60_s17, %s7124_s2  ;;  %p7130_p1 = scmp.lt.s32.totalorder %s7124_s2, %s7124_s2 }
  0x3f   :  { %p7131_p2 = por %p7130_p1, %p7129_p0 }
  0x41   :  { %p7132_p3 = pnand %p7131_p2, %p7125_p13 }
  0x43   :  { %7135 = shalt.err (!%p7132_p3)
}
  0x44   :  { %65 = dma.hbm_to_vmem [thread:$0]  %s8020_s4, 640, %s60_s17, [#allocation9], %s7191_s11, %s7191_s11, %s7192_s12  }
  0x45   :  { %7180 = dma.done.wait [#allocation3], 128  }
  0x46   :  { %7181 = vsyncadd [#allocation3], 4294967168 }
  0x47   :  { %7182 = dma.done.wait [#allocation6], 896  }
  0x48   :  { %7183 = vsyncadd [#allocation6], 4294966400 }
  0x49   :  { %7184 = dma.done.wait [#allocation9], 640  }
  0x4a   :  { %7185 = vsyncadd [#allocation9], 4294966656  ;;  %v7196_v0 = vmov 0.0|0.0   ;;  %vm7197_vm0 = vmmov 0   ;;  %v7198_v1 = vmov 0.0   ;;  %vm87_vm1 = vcmask 1042432  }
  0x4b   :  { %6571 = vmatprep.subr.bf16.mxu1 %v7196_v0  ;;  %6541 = vmatprep.subr.bf16.mxu0 %v7196_v0  ;;  %v550_v2 = vld [vmem:[#allocation7] sm:$0xff]  ;;  %v551_v3 = vld [vmem:[#allocation7 + $0x8] sm:$0xff]  ;;  %v81_v4 = vld [vmem:[#allocation5] sm:$0xff]  ;;  %vm83_vm2 = vcmask 89088   ;;  %vm560_vm3 = vcmask 1040384   ;;  %vm556_vm4 = vcmask 269312  }
  0x4c   :  { %5801 = vmatprep.mubr.msk.f32.mxu0 %vm7197_vm0, %v7198_v1  ;;  %5875 = vmatprep.mubr.msk.f32.mxu1 %vm7197_vm0, %v7198_v1  ;;  %v565_v5 = vand.u32 4294901760, %v550_v2  ;;  %v568_v6 = vand.u32 4294901760, %v551_v3  ;;  %v82_v7 = vld [vmem:[#allocation5 + $0x8] sm:$0x7]  ;;  %v92_v8 = vand.u32 4294901760, %v81_v4  ;;  %v552_v9 = vld [vmem:[#allocation7 + $0x10] sm:$0xff] }
  0x4d   :  { %v89_v10 = vsel %vm87_vm1, %v82_v7, 0  ;;  %v553_v11 = vld [vmem:[#allocation7 + $0x18] sm:$0xff]  ;;  %v571_v12 = vand.u32 4294901760, %v552_v9  ;;  %v80_v13 = vld [vmem:[#allocation2] sm:$0xff]  ;;  %v554_v17 = vld [vmem:[#allocation7 + $0x20] sm:$0x1] }
  0x4e   :  { %v7308_v14 = vsub.f32 %v550_v2, %v565_v5  ;;  %v7310_v15 = vsub.f32 %v551_v3, %v568_v6  ;;  %v95_v16 = vand.u32 4294901760, %v89_v10  ;;  %v7312_v18 = vsub.f32 %v81_v4, %v92_v8  ;;  %v7320_v22 = vld [vmem:[%s8017_s1] sm:$0x1]  ;;  %s7199_s1 = smov 64   ;;  %s7200_s12 = smov 96  }
  0x4f   :  { %v574_v19 = vand.u32 4294901760, %v553_v11  ;;  %v7314_v20 = vsub.f32 %v552_v9, %v571_v12  ;;  %v85_v21 = vsel %vm83_vm2, %v80_v13, 0  ;;  %v562_v29 = vsel %vm560_vm3, %v554_v17, 0  ;;  %s7201_s25 = smov 32   ;;  %s7202_s29 = smov [#allocation11]  }
  0x50   :  { %v7324_v23 = vpack.c.bf16 %v7310_v15, %v7308_v14  ;;  %v7326_v24 = vpack.c.bf16 %v95_v16, %v92_v8  ;;  %v7328_v25 = vsub.f32 %v89_v10, %v95_v16  ;;  %v7330_v26 = vand.u32 4294901760, %v85_v21 }
  0x51   :  { %v7332_v27 = vsub.f32 %v553_v11, %v574_v19  ;;  %v171_v28 = vand.u32 4294901760, %v7312_v18  ;;  %v7342_v32 = vand.u32 4294901760, %v562_v29  ;;  %v558_v33 = vsel %vm556_vm4, %v7320_v22, 0 }
  0x52   :  { %6573 = vmatpush3.bf16.msra.mxu1 %v7324_v23  ;;  %6543 = vmatpush3.bf16.msra.mxu0 %v7326_v24  ;;  %v7339_v30 = vsub.f32 %v85_v21, %v7330_v26  ;;  %v178_v31 = vand.u32 4294901760, %v7328_v25  ;;  %v7357_v38 = vand.u32 4294901760, %v558_v33  ;;  %v7368_v46 = vpack.c.bf16 %v568_v6, %v565_v5 }
  0x53   :  { %6574 = vmatprep.subr.bf16.mxu1 %v7196_v0  ;;  %v7349_v34 = vpack.c.bf16 %v7332_v27, %v7314_v20  ;;  %6544 = vmatprep.subr.bf16.mxu0 %v7196_v0  ;;  %v172_v35 = vsub.f32 %v7312_v18, %v171_v28  ;;  %v7362_v42 = vsub.f32 %v562_v29, %v7342_v32  ;;  %v647_v49 = vand.u32 4294901760, %v7308_v14 }
  0x54   :  { %v160_v36 = vand.u32 4294901760, %v7339_v30  ;;  %v179_v37 = vsub.f32 %v7328_v25, %v178_v31  ;;  %v7366_v45 = vsub.f32 %v558_v33, %v7357_v38  ;;  %v7375_v47 = vpack.c.bf16 %v574_v19, %v571_v12 }
  0x55   :  { %v173_v39 = vand.u32 4294901760, %v172_v35  ;;  %v6548_v48 = vpack.c.bf16 %v7328_v25, %v7312_v18  ;;  %v654_v50 = vand.u32 4294901760, %v7310_v15  ;;  %v661_v53 = vand.u32 4294901760, %v7314_v20 }
  0x56   :  { %6576 = vmatpush3.bf16.msra.mxu1 %v7349_v34  ;;  %v161_v40 = vsub.f32 %v7339_v30, %v160_v36  ;;  %v180_v41 = vand.u32 4294901760, %v179_v37  ;;  %v636_v51 = vand.u32 4294901760, %v7366_v45  ;;  %v668_v54 = vand.u32 4294901760, %v7332_v27 }
  0x57   :  { %5873 = vmatprep.subr.mxu1 %v7198_v1  ;;  %v7392_v52 = vpack.c.bf16 %v654_v50, %v647_v49  ;;  %v7409_v56 = vand.u32 4294901760, %v7362_v42  ;;  %v6554_v57 = vpack.c.bf16 %v178_v31, %v171_v28  ;;  %v648_v58 = vsub.f32 %v7308_v14, %v647_v49 }
  0x58   :  { %v162_v43 = vand.u32 4294901760, %v161_v40  ;;  %v6545_v44 = vpack.c.bf16 %v180_v41, %v173_v39  ;;  %v7400_v55 = vpack.c.bf16 %v668_v54, %v661_v53  ;;  %v655_v59 = vsub.f32 %v7310_v15, %v654_v50 }
  0x59   :  { %v637_v60 = vsub.f32 %v7366_v45, %v636_v51  ;;  %v649_v61 = vand.u32 4294901760, %v648_v58  ;;  %v662_v63 = vsub.f32 %v7314_v20, %v661_v53  ;;  %v669_v2 = vsub.f32 %v7332_v27, %v668_v54 }
  0x5a   :  { %5802 = vmatmul.mubr.f32.vlgmr.msra.gmra.mrb[0].mxu0 %v162_v43  ;;  %5874 = vmatpush3.msra.mxu1 %v7362_v42  ;;  %v656_v62 = vand.u32 4294901760, %v655_v59  ;;  %v676_v8 = vsub.f32 %v7362_v42, %v7409_v56  ;;  %v1086_v28 = vlaneseq  ;;  %vm1099_vm5 = vcmask 261120  }
  0x5b   :  { %6546 = vmatpush3.bf16.msra.mxu0 %v6545_v44  ;;  %6577 = vmatprep.subr.bf16.mxu1 %v7196_v0  ;;  %v638_v3 = vand.u32 4294901760, %v637_v60  ;;  %v663_v5 = vand.u32 4294901760, %v662_v63  ;;  %v670_v6 = vand.u32 4294901760, %v669_v2  ;;  %vm4875_vm6 = vcmask 1041408  }
  0x5c   :  { %5876 = vmatmul.mubr.f32.vlgmr.msra.gmra.mrb[0].mxu1 %v7366_v45  ;;  %5808 = vmatprep.mubr.msk.f32.mxu0 %vm7197_vm0, %v7198_v1  ;;  %v7457_v4 = vpack.c.bf16 %v656_v62, %v649_v61  ;;  %v7470_v9 = vand.u32 4294901760, %v676_v8  ;;  %v1087_v29 = vshrl.u32 %v1086_v28, 7  ;;  %vm4878_vm7 = vcmask 1043456  }
  0x5d   :  { %6579 = vmatpush3.bf16.msra.mxu1 %v7368_v46  ;;  %6547 = vmatprep.subr.bf16.mxu0 %v7196_v0  ;;  %v7462_v7 = vpack.c.bf16 %v670_v6, %v663_v5  ;;  %vm4880_vm8 = vcmask 1044480   ;;  %vm4882_vm9 = vcmask 1045504   ;;  %vm4884_vm10 = vcmask 1046528  }
  0x5e   :  { %6580 = vmatprep.subr.bf16.mxu1 %v7196_v0  ;;  %5888 = vmatprep.mubr.msk.f32.mxu1 %vm7197_vm0, %v7198_v1  ;;  %vm4872_vm12 = vcmask 261127  }
  0x61   :  { %6582 = vmatpush3.bf16.msra.mxu1 %v7375_v47 }
  0x62   :  { %5809 = vmatmul.mubr.f32.vlgmr.msra.gmra.mrb[0].mxu0 %v7330_v26  ;;  %5886 = vmatprep.subr.mxu1 %v7198_v1 }
  0x63   :  { %6549 = vmatpush3.bf16.msra.mxu0 %v6548_v48  ;;  %5815 = vmatprep.mubr.msk.f32.mxu0 %vm7197_vm0, %v7198_v1 }
  0x64   :  { %6550 = vmatprep.subr.bf16.mxu0 %v7196_v0 }
  0x65   :  { %5887 = vmatpush3.msra.mxu1 %v7342_v32 }
  0x66   :  { %6583 = vmatprep.subr.bf16.mxu1 %v7196_v0  ;;  %5889 = vmatmul.mubr.f32.vlgmr.msra.gmra.mrb[0].mxu1 %v636_v51 }
  0x67   :  { %6585 = vmatpush3.bf16.msra.mxu1 %v7392_v52  ;;  %5901 = vmatprep.mubr.msk.f32.mxu1 %vm7197_vm0, %v7198_v1 }
  0x68   :  { %6586 = vmatprep.subr.bf16.mxu1 %v7196_v0 }
  0x6a   :  { %5816 = vmatmul.mubr.f32.vlgmr.msra.gmra.mrb[0].mxu0 %v7339_v30  ;;  %v1088_v30 = vsub.s32 0, %v1087_v29 }
  0x6b   :  { %6552 = vmatpush3.bf16.msra.mxu0 %v7326_v24  ;;  %6588 = vmatpush3.bf16.msra.mxu1 %v7400_v55 }
  0x6c   :  { %5899 = vmatprep.subr.mxu1 %v7198_v1  ;;  %5822 = vmatprep.mubr.msk.f32.mxu0 %vm7197_vm0, %v7198_v1  ;;  %v1089_v33 = vrot.slane %v7320_v22, %v1088_v30 }
  0x6d   :  { %6553 = vmatprep.subr.bf16.mxu0 %v7196_v0 }
  0x6f   :  { %5900 = vmatpush3.msra.mxu1 %v7409_v56 }
  0x70   :  { %6589 = vmatprep.subr.bf16.mxu1 %v7196_v0  ;;  %5902 = vmatmul.mubr.f32.vlgmr.msra.gmra.mrb[0].mxu1 %v7357_v38 }
  0x71   :  { %6591 = vmatpush3.bf16.msra.mxu1 %v7368_v46  ;;  %5914 = vmatprep.mubr.msk.f32.mxu1 %vm7197_vm0, %v7198_v1 }
  0x72   :  { %5823 = vmatmul.mubr.f32.vlgmr.msra.gmra.mrb[0].mxu0 %v160_v36  ;;  %6592 = vmatprep.subr.bf16.mxu1 %v7196_v0 }
  0x73   :  { %6555 = vmatpush3.bf16.msra.mxu0 %v6554_v57  ;;  %5829 = vmatprep.mubr.msk.f32.mxu0 %vm7197_vm0, %v7198_v1 }
  0x74   :  { %6556 = vmatprep.subr.bf16.mxu0 %v7196_v0 }
  0x75   :  { %6594 = vmatpush3.bf16.msra.mxu1 %v7375_v47 }
  0x76   :  { %5912 = vmatprep.subr.mxu1 %v7198_v1 }
  0x79   :  { %5913 = vmatpush3.msra.mxu1 %v7342_v32 }
  0x7a   :  { %5830 = vmatmul.mubr.f32.vlgmr.msra.gmra.mrb[0].mxu0 %v7330_v26  ;;  %5915 = vmatmul.mubr.f32.vlgmr.msra.gmra.mrb[0].mxu1 %v7357_v38 }
  0x7b   :  { %6558 = vmatpush3.bf16.msra.mxu0 %v7326_v24  ;;  %5836 = vmatprep.mubr.msk.f32.mxu0 %vm7197_vm0, %v7198_v1 }
  0x7c   :  { %6559 = vmatprep.subr.bf16.mxu0 %v7196_v0  ;;  %6631 = vmatprep.subr.bf16.mxu1 %v7196_v0 }
  0x7d   :  { %6633 = vmatpush3.bf16.msra.mxu1 %v7368_v46  ;;  %6005 = vmatprep.mubr.msk.f32.mxu1 %vm7197_vm0, %v7198_v1 }
  0x7e   :  { %6634 = vmatprep.subr.bf16.mxu1 %v7196_v0 }
  0x81   :  { %6636 = vmatpush3.bf16.msra.mxu1 %v7375_v47 }
  0x82   :  { %5837 = vmatmul.mubr.f32.vlgmr.msra.gmra.mrb[0].mxu0 %v7330_v26  ;;  %6003 = vmatprep.subr.mxu1 %v7198_v1 }
  0x83   :  { %6561 = vmatpush3.bf16.msra.mxu0 %v7368_v46  ;;  %5849 = vmatprep.mubr.msk.f32.mxu0 %vm7197_vm0, %v7198_v1 }
  0x84   :  { %6562 = vmatprep.subr.bf16.mxu0 %v7196_v0 }
  0x85   :  { %6004 = vmatpush3.msra.mxu1 %v7342_v32 }
  0x86   :  { %6637 = vmatprep.subr.bf16.mxu1 %v7196_v0 }
  0x87   :  { %6564 = vmatpush3.bf16.msra.mxu0 %v7375_v47 }
  0x88   :  { %5847 = vmatprep.subr.mxu0 %v7198_v1 }
  0x8b   :  { %5848 = vmatpush3.msra.mxu0 %v7342_v32 }
  0x8c   :  { %6565 = vmatprep.subr.bf16.mxu0 %v7196_v0  ;;  %5850 = vmatmul.mubr.f32.vlgmr.msra.gmra.mrb[2].mxu0 %v638_v3 }
  0x8d   :  { %6567 = vmatpush3.bf16.msra.mxu0 %v7457_v4  ;;  %5862 = vmatprep.mubr.msk.f32.mxu0 %vm7197_vm0, %v7198_v1 }
  0x8e   :  { %6568 = vmatprep.subr.bf16.mxu0 %v7196_v0 }
  0x91   :  { %6570 = vmatpush3.bf16.msra.mxu0 %v7462_v7 }
  0x92   :  { %5860 = vmatprep.subr.mxu0 %v7198_v1 }
  0x95   :  { %5861 = vmatpush3.msra.mxu0 %v7470_v9 }
  0x96   :  { %5863 = vmatmul.mubr.f32.vlgmr.msra.gmra.mrb[2].mxu0 %v7357_v38  ;;  %6595 = vmatprep.subr.bf16.mxu0 %v7196_v0 }
  0x97   :  { %6597 = vmatpush3.bf16.msra.mxu0 %v7368_v46  ;;  %5927 = vmatprep.mubr.msk.f32.mxu0 %vm7197_vm0, %v7198_v1 }
  0x98   :  { %6598 = vmatprep.subr.bf16.mxu0 %v7196_v0 }
  0x9b   :  { %6600 = vmatpush3.bf16.msra.mxu0 %v7375_v47 }
  0x9c   :  { %5925 = vmatprep.subr.mxu0 %v7198_v1 }
  0x9f   :  { %5926 = vmatpush3.msra.mxu0 %v7342_v32 }
  0xa0   :  { %6601 = vmatprep.subr.bf16.mxu0 %v7196_v0 }
 0x14d   :  { %v1058_v10 = vpop.f32.mrb[0].mxu1 }
 0x14e   :  { %v5916_v11 = vpop.f32.mrb[1].mxu1 }
 0x155   :  { %v7484_v12 = vpop.f32.mrb[0].mxu0 }
 0x156   :  { %v5838_v13 = vpop.f32.mrb[1].mxu0 }
 0x169   :  { %v736_v14 = vpop.f32.mrb[2].mxu0 }
 0x16a   :  { %v6883_v15 = vadd.f32 %v1058_v10, %v736_v14  ;;  %v5864_v16 = vpop.f32.mrb[3].mxu0 }
 0x16c   :  { %v1062_v17 = vadd.f32 %v6883_v15, %v7484_v12  ;;  %1070 = vrot.lane.b32.xlu0 %v6883_v15, %s7199_s1 }
 0x16e   :  { %v5447_v18 = vmul.f32 -1.442695, %v1062_v17 }
 0x170   :  { %6996 = vpow2.f32 %v5447_v18 }
 0x17a   :  { %v6997_v19 = vpop.eup %6996 }
 0x17b   :  { %v1066_v20 = vadd.f32 1.0, %v6997_v19 }
 0x17d   :  { %6998 = vrcp.f32 %v1066_v20 }
 0x187   :  { %v6999_v21 = vpop.eup %6998 }
 0x188   :  { %v1080_v36 = vsub.f32 1.0, %v6999_v21 }
 0x1de   :  { %v1071_v24 = vpop.permute.xlu0 %1070 }
 0x1df   :  { %v1073_v25 = vmul.f32 %v6999_v21, %v1071_v24 }
 0x1e1   :  { %1075 = vrot.lane.b32.xlu0 %v1073_v25, %s7199_s1 }
 0x253   :  { %v1076_v26 = vpop.permute.xlu0 %1075 }
 0x254   :  { %v1078_v27 = vadd.f32 %v1076_v26, %v7484_v12 }
 0x256   :  { %7000 = vtanh.f32 %v1078_v27 }
 0x260   :  { %v7001_v31 = vpop.eup %7000 }
 0x261   :  { %1082 = vrot.lane.b32.xlu1 %v7001_v31, %s7200_s12 }
 0x265   :  { %1090 = vrot.lane.b32.xlu1 %v1089_v33, %s7201_s25 }
 0x2d3   :  { %v1083_v35 = vpop.permute.xlu1 %1082 }
 0x2d4   :  { %v1085_v38 = vmul.f32 %v1083_v35, %v1080_v36 }
 0x2d7   :  { %v1091_v37 = vpop.permute.xlu1 %1090 }
 0x2d8   :  { %v1093_v39 = vmul.f32 %v6999_v21, %v1091_v37 }
 0x2da   :  { %v7494_v40 = vadd.f32 %v1093_v39, %v1085_v38 }
 0x2dc   :  { %1096 = vrot.lane.b32.xlu0 %v7494_v40, %s7200_s12 }
 0x34e   :  { %v1097_v41 = vpop.permute.xlu0 %1096 }
 0x34f   :  { %v7499_v43 = vsel %vm1099_vm5, %v1097_v41, 1.0 }
 0x350   :  { %v1102_v22 = vsel %vm556_vm4, %v7499_v43, 0  ;;  %v1628_v2 = vrot.slane %v7499_v43, 7 }
 0x351   :  { %v1174_v44 = vand.u32 4294901760, %v1102_v22 }
 0x353   :  { %v1175_v45 = vsub.f32 %v1102_v22, %v1174_v44 }
 0x355   :  { %v1176_v48 = vand.u32 4294901760, %v1175_v45 }
 0x357   :  { %v1177_v49 = vsub.f32 %v1175_v45, %v1176_v48 }
 0x359   :  { %v1178_v50 = vand.u32 4294901760, %v1177_v49 }
 0x35b   :  { %5928 = vmatmul.mubr.f32.vlgmr.msra.gmra.mrb[4].mxu0 %v1178_v50 }
 0x35c   :  { %6603 = vmatpush3.bf16.msra.mxu0 %v7457_v4  ;;  %5940 = vmatprep.mubr.msk.f32.mxu0 %vm7197_vm0, %v7198_v1 }
 0x35d   :  { %6604 = vmatprep.subr.bf16.mxu0 %v7196_v0 }
 0x360   :  { %6606 = vmatpush3.bf16.msra.mxu0 %v7462_v7 }
 0x361   :  { %5938 = vmatprep.subr.mxu0 %v7198_v1 }
 0x364   :  { %5939 = vmatpush3.msra.mxu0 %v7470_v9 }
 0x365   :  { %5941 = vmatmul.mubr.f32.vlgmr.msra.gmra.mrb[4].mxu0 %v1174_v44  ;;  %6607 = vmatprep.subr.bf16.mxu0 %v7196_v0 }
 0x366   :  { %6609 = vmatpush3.bf16.msra.mxu0 %v7324_v23  ;;  %5953 = vmatprep.mubr.msk.f32.mxu0 %vm7197_vm0, %v7198_v1 }
 0x367   :  { %6610 = vmatprep.subr.bf16.mxu0 %v7196_v0 }
 0x36a   :  { %6612 = vmatpush3.bf16.msra.mxu0 %v7349_v34 }
 0x36b   :  { %5951 = vmatprep.subr.mxu0 %v7198_v1 }
 0x36e   :  { %5952 = vmatpush3.msra.mxu0 %v7362_v42 }
 0x36f   :  { %5954 = vmatmul.mubr.f32.vlgmr.msra.gmra.mrb[4].mxu0 %v1175_v45  ;;  %6613 = vmatprep.subr.bf16.mxu0 %v7196_v0 }
 0x370   :  { %6615 = vmatpush3.bf16.msra.mxu0 %v7368_v46  ;;  %5966 = vmatprep.mubr.msk.f32.mxu0 %vm7197_vm0, %v7198_v1 }
 0x371   :  { %6616 = vmatprep.subr.bf16.mxu0 %v7196_v0 }
 0x374   :  { %6618 = vmatpush3.bf16.msra.mxu0 %v7375_v47 }
 0x375   :  { %5964 = vmatprep.subr.mxu0 %v7198_v1 }
 0x378   :  { %5965 = vmatpush3.msra.mxu0 %v7342_v32 }
 0x379   :  { %5967 = vmatmul.mubr.f32.vlgmr.msra.gmra.mrb[4].mxu0 %v1176_v48  ;;  %6619 = vmatprep.subr.bf16.mxu0 %v7196_v0 }
 0x37a   :  { %6621 = vmatpush3.bf16.msra.mxu0 %v7392_v52  ;;  %5979 = vmatprep.mubr.msk.f32.mxu0 %vm7197_vm0, %v7198_v1 }
 0x37b   :  { %6622 = vmatprep.subr.bf16.mxu0 %v7196_v0 }
 0x37e   :  { %6624 = vmatpush3.bf16.msra.mxu0 %v7400_v55 }
 0x37f   :  { %5977 = vmatprep.subr.mxu0 %v7198_v1 }
 0x382   :  { %5978 = vmatpush3.msra.mxu0 %v7409_v56 }
 0x383   :  { %5980 = vmatmul.mubr.f32.vlgmr.msra.gmra.mrb[4].mxu0 %v1174_v44  ;;  %6625 = vmatprep.subr.bf16.mxu0 %v7196_v0 }
 0x384   :  { %6627 = vmatpush3.bf16.msra.mxu0 %v7368_v46  ;;  %5992 = vmatprep.mubr.msk.f32.mxu0 %vm7197_vm0, %v7198_v1 }
 0x385   :  { %6628 = vmatprep.subr.bf16.mxu0 %v7196_v0 }
 0x388   :  { %6630 = vmatpush3.bf16.msra.mxu0 %v7375_v47 }
 0x389   :  { %5990 = vmatprep.subr.mxu0 %v7198_v1 }
 0x38c   :  { %5991 = vmatpush3.msra.mxu0 %v7342_v32 }
 0x38d   :  { %5993 = vmatmul.mubr.f32.vlgmr.msra.gmra.mrb[4].mxu0 %v1174_v44  ;;  %6667 = vmatprep.subr.bf16.mxu0 %v7196_v0 }
 0x38e   :  { %6669 = vmatpush3.bf16.msra.mxu0 %v7368_v46  ;;  %6083 = vmatprep.mubr.msk.f32.mxu0 %vm7197_vm0, %v7198_v1 }
 0x38f   :  { %6670 = vmatprep.subr.bf16.mxu0 %v7196_v0 }
 0x392   :  { %6672 = vmatpush3.bf16.msra.mxu0 %v7375_v47 }
 0x393   :  { %6081 = vmatprep.subr.mxu0 %v7198_v1 }
 0x396   :  { %6082 = vmatpush3.msra.mxu0 %v7342_v32 }
 0x397   :  { %6673 = vmatprep.subr.bf16.mxu0 %v7196_v0 }
 0x460   :  { %v1598_v51 = vpop.f32.mrb[4].mxu0 }
 0x461   :  { %v1603_v53 = vrot.slane %v1598_v51, 7  ;;  %v5994_v54 = vpop.f32.mrb[5].mxu0 }
 0x463   :  { %v1605_v57 = vadd.f32 %v1603_v53, %v7484_v12  ;;  %1612 = vrot.lane.b32.xlu1 %v1603_v53, %s7199_s1 }
 0x465   :  { %v5448_v58 = vmul.f32 -1.442695, %v1605_v57 }
 0x467   :  { %7002 = vpow2.f32 %v5448_v58 }
 0x471   :  { %v7003_v59 = vpop.eup %7002 }
 0x472   :  { %v1609_v60 = vadd.f32 1.0, %v7003_v59 }
 0x474   :  { %7004 = vrcp.f32 %v1609_v60 }
 0x47e   :  { %v7005_v61 = vpop.eup %7004 }
 0x47f   :  { %v1622_v10 = vsub.f32 1.0, %v7005_v61 }
 0x4d5   :  { %v1613_v62 = vpop.permute.xlu1 %1612 }
 0x4d6   :  { %v1615_v63 = vmul.f32 %v7005_v61, %v1613_v62 }
 0x4d8   :  { %1617 = vrot.lane.b32.xlu0 %v1615_v63, %s7199_s1 }
 0x4dc   :  { %1629 = vrot.lane.b32.xlu0 %v1628_v2, %s7201_s25 }
 0x54a   :  { %v1618_v3 = vpop.permute.xlu0 %1617 }
 0x54b   :  { %v1620_v5 = vadd.f32 %v1618_v3, %v7484_v12 }
 0x54d   :  { %7006 = vtanh.f32 %v1620_v5 }
 0x54e   :  { %v1630_v8 = vpop.permute.xlu0 %1629 }
 0x54f   :  { %v1632_v13 = vmul.f32 %v7005_v61, %v1630_v8 }
 0x557   :  { %v7007_v6 = vpop.eup %7006 }
 0x558   :  { %1624 = vrot.lane.b32.xlu1 %v7007_v6, %s7200_s12 }
 0x5ca   :  { %v1625_v11 = vpop.permute.xlu1 %1624 }
 0x5cb   :  { %v1627_v14 = vmul.f32 %v1625_v11, %v1622_v10 }
 0x5cd   :  { %v7558_v15 = vadd.f32 %v1632_v13, %v1627_v14 }
 0x5cf   :  { %1635 = vrot.lane.b32.xlu1 %v7558_v15, %s7200_s12  ;;  %v4874_v54 = vsel %vm560_vm3, %v7494_v40, %v7558_v15 }
 0x641   :  { %v1636_v16 = vpop.permute.xlu1 %1635 }
 0x642   :  { %v7563_v17 = vsel %vm1099_vm5, %v1636_v16, 1.0 }
 0x643   :  { %v1640_v18 = vrot.slane %v7563_v17, 1  ;;  %v2167_v41 = vrot.slane %v7563_v17, 7 }
 0x645   :  { %v1641_v19 = vsel %vm556_vm4, %v1640_v18, 0 }
 0x646   :  { %v1713_v20 = vand.u32 4294901760, %v1641_v19 }
 0x648   :  { %v1714_v21 = vsub.f32 %v1641_v19, %v1713_v20 }
 0x64a   :  { %v1715_v24 = vand.u32 4294901760, %v1714_v21 }
 0x64c   :  { %v1716_v25 = vsub.f32 %v1714_v21, %v1715_v24 }
 0x64e   :  { %v1717_v26 = vand.u32 4294901760, %v1716_v25 }
 0x650   :  { %6006 = vmatmul.mubr.f32.vlgmr.msra.gmra.mrb[2].mxu1 %v1717_v26 }
 0x651   :  { %6639 = vmatpush3.bf16.msra.mxu1 %v7457_v4  ;;  %6018 = vmatprep.mubr.msk.f32.mxu1 %vm7197_vm0, %v7198_v1 }
 0x652   :  { %6640 = vmatprep.subr.bf16.mxu1 %v7196_v0 }
 0x655   :  { %6642 = vmatpush3.bf16.msra.mxu1 %v7462_v7 }
 0x656   :  { %6016 = vmatprep.subr.mxu1 %v7198_v1 }
 0x659   :  { %6017 = vmatpush3.msra.mxu1 %v7470_v9 }
 0x65a   :  { %6019 = vmatmul.mubr.f32.vlgmr.msra.gmra.mrb[2].mxu1 %v1713_v20  ;;  %6643 = vmatprep.subr.bf16.mxu1 %v7196_v0 }
 0x65b   :  { %6645 = vmatpush3.bf16.msra.mxu1 %v7324_v23  ;;  %6031 = vmatprep.mubr.msk.f32.mxu1 %vm7197_vm0, %v7198_v1 }
 0x65c   :  { %6646 = vmatprep.subr.bf16.mxu1 %v7196_v0 }
 0x65f   :  { %6648 = vmatpush3.bf16.msra.mxu1 %v7349_v34 }
 0x660   :  { %6029 = vmatprep.subr.mxu1 %v7198_v1 }
 0x663   :  { %6030 = vmatpush3.msra.mxu1 %v7362_v42 }
 0x664   :  { %6032 = vmatmul.mubr.f32.vlgmr.msra.gmra.mrb[2].mxu1 %v1714_v21  ;;  %6649 = vmatprep.subr.bf16.mxu1 %v7196_v0 }
 0x665   :  { %6651 = vmatpush3.bf16.msra.mxu1 %v7368_v46  ;;  %6044 = vmatprep.mubr.msk.f32.mxu1 %vm7197_vm0, %v7198_v1 }
 0x666   :  { %6652 = vmatprep.subr.bf16.mxu1 %v7196_v0 }
 0x669   :  { %6654 = vmatpush3.bf16.msra.mxu1 %v7375_v47 }
 0x66a   :  { %6042 = vmatprep.subr.mxu1 %v7198_v1 }
 0x66d   :  { %6043 = vmatpush3.msra.mxu1 %v7342_v32 }
 0x66e   :  { %6045 = vmatmul.mubr.f32.vlgmr.msra.gmra.mrb[2].mxu1 %v1715_v24  ;;  %6655 = vmatprep.subr.bf16.mxu1 %v7196_v0 }
 0x66f   :  { %6657 = vmatpush3.bf16.msra.mxu1 %v7392_v52  ;;  %6057 = vmatprep.mubr.msk.f32.mxu1 %vm7197_vm0, %v7198_v1 }
 0x670   :  { %6658 = vmatprep.subr.bf16.mxu1 %v7196_v0 }
 0x673   :  { %6660 = vmatpush3.bf16.msra.mxu1 %v7400_v55 }
 0x674   :  { %6055 = vmatprep.subr.mxu1 %v7198_v1 }
 0x677   :  { %6056 = vmatpush3.msra.mxu1 %v7409_v56 }
 0x678   :  { %6058 = vmatmul.mubr.f32.vlgmr.msra.gmra.mrb[2].mxu1 %v1713_v20  ;;  %6661 = vmatprep.subr.bf16.mxu1 %v7196_v0 }
 0x679   :  { %6663 = vmatpush3.bf16.msra.mxu1 %v7368_v46  ;;  %6070 = vmatprep.mubr.msk.f32.mxu1 %vm7197_vm0, %v7198_v1 }
 0x67a   :  { %6664 = vmatprep.subr.bf16.mxu1 %v7196_v0 }
 0x67d   :  { %6666 = vmatpush3.bf16.msra.mxu1 %v7375_v47 }
 0x67e   :  { %6068 = vmatprep.subr.mxu1 %v7198_v1 }
 0x681   :  { %6069 = vmatpush3.msra.mxu1 %v7342_v32 }
 0x682   :  { %6071 = vmatmul.mubr.f32.vlgmr.msra.gmra.mrb[2].mxu1 %v1713_v20  ;;  %6703 = vmatprep.subr.bf16.mxu1 %v7196_v0 }
 0x683   :  { %6705 = vmatpush3.bf16.msra.mxu1 %v7368_v46  ;;  %6161 = vmatprep.mubr.msk.f32.mxu1 %vm7197_vm0, %v7198_v1 }
 0x684   :  { %6706 = vmatprep.subr.bf16.mxu1 %v7196_v0 }
 0x687   :  { %6708 = vmatpush3.bf16.msra.mxu1 %v7375_v47 }
 0x688   :  { %6159 = vmatprep.subr.mxu1 %v7198_v1 }
 0x68b   :  { %6160 = vmatpush3.msra.mxu1 %v7342_v32 }
 0x68c   :  { %6709 = vmatprep.subr.bf16.mxu1 %v7196_v0 }
 0x755   :  { %v2137_v27 = vpop.f32.mrb[2].mxu1 }
 0x756   :  { %v2142_v29 = vrot.slane %v2137_v27, 6  ;;  %v6072_v30 = vpop.f32.mrb[3].mxu1 }
 0x758   :  { %v2144_v31 = vadd.f32 %v2142_v29, %v7484_v12  ;;  %2151 = vrot.lane.b32.xlu0 %v2142_v29, %s7199_s1 }
 0x75a   :  { %v5449_v33 = vmul.f32 -1.442695, %v2144_v31 }
 0x75c   :  { %7008 = vpow2.f32 %v5449_v33 }
 0x766   :  { %v7009_v35 = vpop.eup %7008 }
 0x767   :  { %v2148_v36 = vadd.f32 1.0, %v7009_v35 }
 0x769   :  { %7010 = vrcp.f32 %v2148_v36 }
 0x773   :  { %v7011_v37 = vpop.eup %7010 }
 0x774   :  { %v2161_v48 = vsub.f32 1.0, %v7011_v37 }
 0x7ca   :  { %v2152_v38 = vpop.permute.xlu0 %2151 }
 0x7cb   :  { %v2154_v39 = vmul.f32 %v7011_v37, %v2152_v38 }
 0x7cd   :  { %2156 = vrot.lane.b32.xlu1 %v2154_v39, %s7199_s1 }
 0x7d1   :  { %2168 = vrot.lane.b32.xlu1 %v2167_v41, %s7201_s25 }
 0x83f   :  { %v2157_v43 = vpop.permute.xlu1 %2156 }
 0x840   :  { %v2159_v22 = vadd.f32 %v2157_v43, %v7484_v12 }
 0x842   :  { %7012 = vtanh.f32 %v2159_v22 }
 0x843   :  { %v2169_v45 = vpop.permute.xlu1 %2168 }
 0x844   :  { %v2171_v50 = vmul.f32 %v7011_v37, %v2169_v45 }
 0x84c   :  { %v7013_v44 = vpop.eup %7012 }
 0x84d   :  { %2163 = vrot.lane.b32.xlu0 %v7013_v44, %s7200_s12 }
 0x8bf   :  { %v2164_v49 = vpop.permute.xlu0 %2163 }
 0x8c0   :  { %v2166_v51 = vmul.f32 %v2164_v49, %v2161_v48 }
 0x8c2   :  { %v2172_v53 = vadd.f32 %v2171_v50, %v2166_v51 }
 0x8c4   :  { %v7625_v57 = vsel %vm4875_vm6, %v4874_v54, %v2172_v53  ;;  %2174 = vrot.lane.b32.xlu0 %v2172_v53, %s7200_s12 }
 0x936   :  { %v2175_v58 = vpop.permute.xlu0 %2174 }
 0x937   :  { %v7629_v59 = vsel %vm1099_vm5, %v2175_v58, 1.0 }
 0x938   :  { %v2179_v60 = vrot.slane %v7629_v59, 2  ;;  %v2706_v18 = vrot.slane %v7629_v59, 7 }
 0x93a   :  { %v2180_v61 = vsel %vm556_vm4, %v2179_v60, 0 }
 0x93b   :  { %v2252_v62 = vand.u32 4294901760, %v2180_v61 }
 0x93d   :  { %v2253_v63 = vsub.f32 %v2180_v61, %v2252_v62 }
 0x93f   :  { %v2254_v2 = vand.u32 4294901760, %v2253_v63 }
 0x941   :  { %v2255_v3 = vsub.f32 %v2253_v63, %v2254_v2 }
 0x943   :  { %v2256_v5 = vand.u32 4294901760, %v2255_v3 }
 0x945   :  { %6084 = vmatmul.mubr.f32.vlgmr.msra.gmra.mrb[6].mxu0 %v2256_v5 }
 0x946   :  { %6675 = vmatpush3.bf16.msra.mxu0 %v7457_v4  ;;  %6096 = vmatprep.mubr.msk.f32.mxu0 %vm7197_vm0, %v7198_v1 }
 0x947   :  { %6676 = vmatprep.subr.bf16.mxu0 %v7196_v0 }
 0x94a   :  { %6678 = vmatpush3.bf16.msra.mxu0 %v7462_v7 }
 0x94b   :  { %6094 = vmatprep.subr.mxu0 %v7198_v1 }
 0x94e   :  { %6095 = vmatpush3.msra.mxu0 %v7470_v9 }
 0x94f   :  { %6097 = vmatmul.mubr.f32.vlgmr.msra.gmra.mrb[6].mxu0 %v2252_v62  ;;  %6679 = vmatprep.subr.bf16.mxu0 %v7196_v0 }
 0x950   :  { %6681 = vmatpush3.bf16.msra.mxu0 %v7324_v23  ;;  %6109 = vmatprep.mubr.msk.f32.mxu0 %vm7197_vm0, %v7198_v1 }
 0x951   :  { %6682 = vmatprep.subr.bf16.mxu0 %v7196_v0 }
 0x954   :  { %6684 = vmatpush3.bf16.msra.mxu0 %v7349_v34 }
 0x955   :  { %6107 = vmatprep.subr.mxu0 %v7198_v1 }
 0x958   :  { %6108 = vmatpush3.msra.mxu0 %v7362_v42 }
 0x959   :  { %6110 = vmatmul.mubr.f32.vlgmr.msra.gmra.mrb[6].mxu0 %v2253_v63  ;;  %6685 = vmatprep.subr.bf16.mxu0 %v7196_v0 }
 0x95a   :  { %6687 = vmatpush3.bf16.msra.mxu0 %v7368_v46  ;;  %6122 = vmatprep.mubr.msk.f32.mxu0 %vm7197_vm0, %v7198_v1 }
 0x95b   :  { %6688 = vmatprep.subr.bf16.mxu0 %v7196_v0 }
 0x95e   :  { %6690 = vmatpush3.bf16.msra.mxu0 %v7375_v47 }
 0x95f   :  { %6120 = vmatprep.subr.mxu0 %v7198_v1 }
 0x962   :  { %6121 = vmatpush3.msra.mxu0 %v7342_v32 }
 0x963   :  { %6123 = vmatmul.mubr.f32.vlgmr.msra.gmra.mrb[6].mxu0 %v2254_v2  ;;  %6691 = vmatprep.subr.bf16.mxu0 %v7196_v0 }
 0x964   :  { %6693 = vmatpush3.bf16.msra.mxu0 %v7392_v52  ;;  %6135 = vmatprep.mubr.msk.f32.mxu0 %vm7197_vm0, %v7198_v1 }
 0x965   :  { %6694 = vmatprep.subr.bf16.mxu0 %v7196_v0 }
 0x968   :  { %6696 = vmatpush3.bf16.msra.mxu0 %v7400_v55 }
 0x969   :  { %6133 = vmatprep.subr.mxu0 %v7198_v1 }
 0x96c   :  { %6134 = vmatpush3.msra.mxu0 %v7409_v56 }
 0x96d   :  { %6136 = vmatmul.mubr.f32.vlgmr.msra.gmra.mrb[6].mxu0 %v2252_v62  ;;  %6697 = vmatprep.subr.bf16.mxu0 %v7196_v0 }
 0x96e   :  { %6699 = vmatpush3.bf16.msra.mxu0 %v7368_v46  ;;  %6148 = vmatprep.mubr.msk.f32.mxu0 %vm7197_vm0, %v7198_v1 }
 0x96f   :  { %6700 = vmatprep.subr.bf16.mxu0 %v7196_v0 }
 0x972   :  { %6702 = vmatpush3.bf16.msra.mxu0 %v7375_v47 }
 0x973   :  { %6146 = vmatprep.subr.mxu0 %v7198_v1 }
 0x976   :  { %6147 = vmatpush3.msra.mxu0 %v7342_v32 }
 0x977   :  { %6149 = vmatmul.mubr.f32.vlgmr.msra.gmra.mrb[6].mxu0 %v2252_v62  ;;  %6739 = vmatprep.subr.bf16.mxu0 %v7196_v0 }
 0x978   :  { %6741 = vmatpush3.bf16.msra.mxu0 %v7368_v46  ;;  %6239 = vmatprep.mubr.msk.f32.mxu0 %vm7197_vm0, %v7198_v1 }
 0x979   :  { %6742 = vmatprep.subr.bf16.mxu0 %v7196_v0 }
 0x97c   :  { %6744 = vmatpush3.bf16.msra.mxu0 %v7375_v47 }
 0x97d   :  { %6237 = vmatprep.subr.mxu0 %v7198_v1 }
 0x980   :  { %6238 = vmatpush3.msra.mxu0 %v7342_v32 }
 0x981   :  { %6745 = vmatprep.subr.bf16.mxu0 %v7196_v0 }
 0xa4a   :  { %v2676_v40 = vpop.f32.mrb[6].mxu0 }
 0xa4b   :  { %v2681_v6 = vrot.slane %v2676_v40, 5  ;;  %v6150_v8 = vpop.f32.mrb[7].mxu0 }
 0xa4d   :  { %v2683_v10 = vadd.f32 %v2681_v6, %v7484_v12  ;;  %2690 = vrot.lane.b32.xlu1 %v2681_v6, %s7199_s1 }
 0xa4f   :  { %v5450_v11 = vmul.f32 -1.442695, %v2683_v10 }
 0xa51   :  { %7014 = vpow2.f32 %v5450_v11 }
 0xa5b   :  { %v7015_v13 = vpop.eup %7014 }
 0xa5c   :  { %v2687_v14 = vadd.f32 1.0, %v7015_v13 }
 0xa5e   :  { %7016 = vrcp.f32 %v2687_v14 }
 0xa68   :  { %v7017_v15 = vpop.eup %7016 }
 0xa69   :  { %v2700_v25 = vsub.f32 1.0, %v7017_v15 }
 0xabf   :  { %v2691_v16 = vpop.permute.xlu1 %2690 }
 0xac0   :  { %v2693_v17 = vmul.f32 %v7017_v15, %v2691_v16 }
 0xac2   :  { %2695 = vrot.lane.b32.xlu0 %v2693_v17, %s7199_s1 }
 0xac6   :  { %2707 = vrot.lane.b32.xlu0 %v2706_v18, %s7201_s25 }
 0xb34   :  { %v2696_v19 = vpop.permute.xlu0 %2695 }
 0xb35   :  { %v2698_v20 = vadd.f32 %v2696_v19, %v7484_v12 }
 0xb37   :  { %7018 = vtanh.f32 %v2698_v20 }
 0xb38   :  { %v2708_v24 = vpop.permute.xlu0 %2707 }
 0xb39   :  { %v2710_v27 = vmul.f32 %v7017_v15, %v2708_v24 }
 0xb41   :  { %v7019_v21 = vpop.eup %7018 }
 0xb42   :  { %2702 = vrot.lane.b32.xlu1 %v7019_v21, %s7200_s12 }
 0xbb4   :  { %v2703_v26 = vpop.permute.xlu1 %2702 }
 0xbb5   :  { %v2705_v29 = vmul.f32 %v2703_v26, %v2700_v25 }
 0xbb7   :  { %v2711_v30 = vadd.f32 %v2710_v27, %v2705_v29 }
 0xbb9   :  { %v7690_v31 = vsel %vm87_vm1, %v7625_v57, %v2711_v30  ;;  %2713 = vrot.lane.b32.xlu1 %v2711_v30, %s7200_s12 }
 0xc2b   :  { %v2714_v33 = vpop.permute.xlu1 %2713 }
 0xc2c   :  { %v7694_v35 = vsel %vm1099_vm5, %v2714_v33, 1.0 }
 0xc2d   :  { %v2718_v36 = vrot.slane %v7694_v35, 3  ;;  %v3245_v59 = vrot.slane %v7694_v35, 7 }
 0xc2f   :  { %v2719_v37 = vsel %vm556_vm4, %v2718_v36, 0 }
 0xc30   :  { %v2791_v38 = vand.u32 4294901760, %v2719_v37 }
 0xc32   :  { %v2792_v39 = vsub.f32 %v2719_v37, %v2791_v38 }
 0xc34   :  { %v2793_v41 = vand.u32 4294901760, %v2792_v39 }
 0xc36   :  { %v2794_v43 = vsub.f32 %v2792_v39, %v2793_v41 }
 0xc38   :  { %v2795_v22 = vand.u32 4294901760, %v2794_v43 }
 0xc3a   :  { %6162 = vmatmul.mubr.f32.vlgmr.msra.gmra.mrb[4].mxu1 %v2795_v22 }
 0xc3b   :  { %6711 = vmatpush3.bf16.msra.mxu1 %v7457_v4  ;;  %6174 = vmatprep.mubr.msk.f32.mxu1 %vm7197_vm0, %v7198_v1 }
 0xc3c   :  { %6712 = vmatprep.subr.bf16.mxu1 %v7196_v0 }
 0xc3f   :  { %6714 = vmatpush3.bf16.msra.mxu1 %v7462_v7 }
 0xc40   :  { %6172 = vmatprep.subr.mxu1 %v7198_v1 }
 0xc43   :  { %6173 = vmatpush3.msra.mxu1 %v7470_v9 }
 0xc44   :  { %6175 = vmatmul.mubr.f32.vlgmr.msra.gmra.mrb[4].mxu1 %v2791_v38  ;;  %6715 = vmatprep.subr.bf16.mxu1 %v7196_v0 }
 0xc45   :  { %6717 = vmatpush3.bf16.msra.mxu1 %v7324_v23  ;;  %6187 = vmatprep.mubr.msk.f32.mxu1 %vm7197_vm0, %v7198_v1 }
 0xc46   :  { %6718 = vmatprep.subr.bf16.mxu1 %v7196_v0 }
 0xc49   :  { %6720 = vmatpush3.bf16.msra.mxu1 %v7349_v34 }
 0xc4a   :  { %6185 = vmatprep.subr.mxu1 %v7198_v1 }
 0xc4d   :  { %6186 = vmatpush3.msra.mxu1 %v7362_v42 }
 0xc4e   :  { %6188 = vmatmul.mubr.f32.vlgmr.msra.gmra.mrb[4].mxu1 %v2792_v39  ;;  %6721 = vmatprep.subr.bf16.mxu1 %v7196_v0 }
 0xc4f   :  { %6723 = vmatpush3.bf16.msra.mxu1 %v7368_v46  ;;  %6200 = vmatprep.mubr.msk.f32.mxu1 %vm7197_vm0, %v7198_v1 }
 0xc50   :  { %6724 = vmatprep.subr.bf16.mxu1 %v7196_v0 }
 0xc53   :  { %6726 = vmatpush3.bf16.msra.mxu1 %v7375_v47 }
 0xc54   :  { %6198 = vmatprep.subr.mxu1 %v7198_v1 }
 0xc57   :  { %6199 = vmatpush3.msra.mxu1 %v7342_v32 }
 0xc58   :  { %6201 = vmatmul.mubr.f32.vlgmr.msra.gmra.mrb[4].mxu1 %v2793_v41  ;;  %6727 = vmatprep.subr.bf16.mxu1 %v7196_v0 }
 0xc59   :  { %6729 = vmatpush3.bf16.msra.mxu1 %v7392_v52  ;;  %6213 = vmatprep.mubr.msk.f32.mxu1 %vm7197_vm0, %v7198_v1 }
 0xc5a   :  { %6730 = vmatprep.subr.bf16.mxu1 %v7196_v0 }
 0xc5d   :  { %6732 = vmatpush3.bf16.msra.mxu1 %v7400_v55 }
 0xc5e   :  { %6211 = vmatprep.subr.mxu1 %v7198_v1 }
 0xc61   :  { %6212 = vmatpush3.msra.mxu1 %v7409_v56 }
 0xc62   :  { %6214 = vmatmul.mubr.f32.vlgmr.msra.gmra.mrb[4].mxu1 %v2791_v38  ;;  %6733 = vmatprep.subr.bf16.mxu1 %v7196_v0 }
 0xc63   :  { %6735 = vmatpush3.bf16.msra.mxu1 %v7368_v46  ;;  %6226 = vmatprep.mubr.msk.f32.mxu1 %vm7197_vm0, %v7198_v1 }
 0xc64   :  { %6736 = vmatprep.subr.bf16.mxu1 %v7196_v0 }
 0xc67   :  { %6738 = vmatpush3.bf16.msra.mxu1 %v7375_v47 }
 0xc68   :  { %6224 = vmatprep.subr.mxu1 %v7198_v1 }
 0xc6b   :  { %6225 = vmatpush3.msra.mxu1 %v7342_v32 }
 0xc6c   :  { %6227 = vmatmul.mubr.f32.vlgmr.msra.gmra.mrb[4].mxu1 %v2791_v38  ;;  %6775 = vmatprep.subr.bf16.mxu1 %v7196_v0 }
 0xc6d   :  { %6777 = vmatpush3.bf16.msra.mxu1 %v7368_v46  ;;  %6317 = vmatprep.mubr.msk.f32.mxu1 %vm7197_vm0, %v7198_v1 }
 0xc6e   :  { %6778 = vmatprep.subr.bf16.mxu1 %v7196_v0 }
 0xc71   :  { %6780 = vmatpush3.bf16.msra.mxu1 %v7375_v47 }
 0xc72   :  { %6315 = vmatprep.subr.mxu1 %v7198_v1 }
 0xc75   :  { %6316 = vmatpush3.msra.mxu1 %v7342_v32 }
 0xc76   :  { %6781 = vmatprep.subr.bf16.mxu1 %v7196_v0 }
 0xd3f   :  { %v3215_v44 = vpop.f32.mrb[4].mxu1 }
 0xd40   :  { %v3220_v45 = vrot.slane %v3215_v44, 4  ;;  %v6228_v48 = vpop.f32.mrb[5].mxu1 }
 0xd42   :  { %v3222_v49 = vadd.f32 %v3220_v45, %v7484_v12  ;;  %3229 = vrot.lane.b32.xlu0 %v3220_v45, %s7199_s1 }
 0xd44   :  { %v5451_v50 = vmul.f32 -1.442695, %v3222_v49 }
 0xd46   :  { %7020 = vpow2.f32 %v5451_v50 }
 0xd50   :  { %v7021_v51 = vpop.eup %7020 }
 0xd51   :  { %v3226_v53 = vadd.f32 1.0, %v7021_v51 }
 0xd53   :  { %7022 = vrcp.f32 %v3226_v53 }
 0xd5d   :  { %v7023_v54 = vpop.eup %7022 }
 0xd5e   :  { %v3239_v2 = vsub.f32 1.0, %v7023_v54 }
 0xdb4   :  { %v3230_v57 = vpop.permute.xlu0 %3229 }
 0xdb5   :  { %v3232_v58 = vmul.f32 %v7023_v54, %v3230_v57 }
 0xdb7   :  { %3234 = vrot.lane.b32.xlu1 %v3232_v58, %s7199_s1 }
 0xdbb   :  { %3246 = vrot.lane.b32.xlu1 %v3245_v59, %s7201_s25 }
 0xe29   :  { %v3235_v60 = vpop.permute.xlu1 %3234 }
 0xe2a   :  { %v3237_v61 = vadd.f32 %v3235_v60, %v7484_v12 }
 0xe2c   :  { %7024 = vtanh.f32 %v3237_v61 }
 0xe2d   :  { %v3247_v63 = vpop.permute.xlu1 %3246 }
 0xe2e   :  { %v3249_v5 = vmul.f32 %v7023_v54, %v3247_v63 }
 0xe36   :  { %v7025_v62 = vpop.eup %7024 }
 0xe37   :  { %3241 = vrot.lane.b32.xlu0 %v7025_v62, %s7200_s12 }
 0xea9   :  { %v3242_v3 = vpop.permute.xlu0 %3241 }
 0xeaa   :  { %v3244_v40 = vmul.f32 %v3242_v3, %v3239_v2 }
 0xeac   :  { %v3250_v6 = vadd.f32 %v3249_v5, %v3244_v40 }
 0xeae   :  { %v7754_v8 = vsel %vm4878_vm7, %v7690_v31, %v3250_v6  ;;  %3252 = vrot.lane.b32.xlu0 %v3250_v6, %s7200_s12 }
 0xf20   :  { %v3253_v10 = vpop.permute.xlu0 %3252 }
 0xf21   :  { %v7758_v11 = vsel %vm1099_vm5, %v3253_v10, 1.0 }
 0xf22   :  { %v3257_v13 = vrot.slane %v7758_v11, 4  ;;  %v3784_v35 = vrot.slane %v7758_v11, 7 }
 0xf24   :  { %v3258_v14 = vsel %vm556_vm4, %v3257_v13, 0 }
 0xf25   :  { %v3330_v15 = vand.u32 4294901760, %v3258_v14 }
 0xf27   :  { %v3331_v16 = vsub.f32 %v3258_v14, %v3330_v15 }
 0xf29   :  { %v3332_v17 = vand.u32 4294901760, %v3331_v16 }
 0xf2b   :  { %v3333_v18 = vsub.f32 %v3331_v16, %v3332_v17 }
 0xf2d   :  { %v3334_v19 = vand.u32 4294901760, %v3333_v18 }
 0xf2f   :  { %6240 = vmatmul.mubr.f32.vlgmr.msra.gmra.mrb[8].mxu0 %v3334_v19 }
 0xf30   :  { %6747 = vmatpush3.bf16.msra.mxu0 %v7457_v4  ;;  %6252 = vmatprep.mubr.msk.f32.mxu0 %vm7197_vm0, %v7198_v1 }
 0xf31   :  { %6748 = vmatprep.subr.bf16.mxu0 %v7196_v0 }
 0xf34   :  { %6750 = vmatpush3.bf16.msra.mxu0 %v7462_v7 }
 0xf35   :  { %6250 = vmatprep.subr.mxu0 %v7198_v1 }
 0xf38   :  { %6251 = vmatpush3.msra.mxu0 %v7470_v9 }
 0xf39   :  { %6253 = vmatmul.mubr.f32.vlgmr.msra.gmra.mrb[8].mxu0 %v3330_v15  ;;  %6751 = vmatprep.subr.bf16.mxu0 %v7196_v0 }
 0xf3a   :  { %6753 = vmatpush3.bf16.msra.mxu0 %v7324_v23  ;;  %6265 = vmatprep.mubr.msk.f32.mxu0 %vm7197_vm0, %v7198_v1 }
 0xf3b   :  { %6754 = vmatprep.subr.bf16.mxu0 %v7196_v0 }
 0xf3e   :  { %6756 = vmatpush3.bf16.msra.mxu0 %v7349_v34 }
 0xf3f   :  { %6263 = vmatprep.subr.mxu0 %v7198_v1 }
 0xf42   :  { %6264 = vmatpush3.msra.mxu0 %v7362_v42 }
 0xf43   :  { %6266 = vmatmul.mubr.f32.vlgmr.msra.gmra.mrb[8].mxu0 %v3331_v16  ;;  %6757 = vmatprep.subr.bf16.mxu0 %v7196_v0 }
 0xf44   :  { %6759 = vmatpush3.bf16.msra.mxu0 %v7368_v46  ;;  %6278 = vmatprep.mubr.msk.f32.mxu0 %vm7197_vm0, %v7198_v1 }
 0xf45   :  { %6760 = vmatprep.subr.bf16.mxu0 %v7196_v0 }
 0xf48   :  { %6762 = vmatpush3.bf16.msra.mxu0 %v7375_v47 }
 0xf49   :  { %6276 = vmatprep.subr.mxu0 %v7198_v1 }
 0xf4c   :  { %6277 = vmatpush3.msra.mxu0 %v7342_v32 }
 0xf4d   :  { %6279 = vmatmul.mubr.f32.vlgmr.msra.gmra.mrb[8].mxu0 %v3332_v17  ;;  %6763 = vmatprep.subr.bf16.mxu0 %v7196_v0 }
 0xf4e   :  { %6765 = vmatpush3.bf16.msra.mxu0 %v7392_v52  ;;  %6291 = vmatprep.mubr.msk.f32.mxu0 %vm7197_vm0, %v7198_v1 }
 0xf4f   :  { %6766 = vmatprep.subr.bf16.mxu0 %v7196_v0 }
 0xf52   :  { %6768 = vmatpush3.bf16.msra.mxu0 %v7400_v55 }
 0xf53   :  { %6289 = vmatprep.subr.mxu0 %v7198_v1 }
 0xf56   :  { %6290 = vmatpush3.msra.mxu0 %v7409_v56 }
 0xf57   :  { %6292 = vmatmul.mubr.f32.vlgmr.msra.gmra.mrb[8].mxu0 %v3330_v15  ;;  %6769 = vmatprep.subr.bf16.mxu0 %v7196_v0 }
 0xf58   :  { %6771 = vmatpush3.bf16.msra.mxu0 %v7368_v46  ;;  %6304 = vmatprep.mubr.msk.f32.mxu0 %vm7197_vm0, %v7198_v1 }
 0xf59   :  { %6772 = vmatprep.subr.bf16.mxu0 %v7196_v0 }
 0xf5c   :  { %6774 = vmatpush3.bf16.msra.mxu0 %v7375_v47 }
 0xf5d   :  { %6302 = vmatprep.subr.mxu0 %v7198_v1 }
 0xf60   :  { %6303 = vmatpush3.msra.mxu0 %v7342_v32 }
 0xf61   :  { %6305 = vmatmul.mubr.f32.vlgmr.msra.gmra.mrb[8].mxu0 %v3330_v15  ;;  %6811 = vmatprep.subr.bf16.mxu0 %v7196_v0 }
 0xf62   :  { %6813 = vmatpush3.bf16.msra.mxu0 %v7368_v46  ;;  %6395 = vmatprep.mubr.msk.f32.mxu0 %vm7197_vm0, %v7198_v1 }
 0xf63   :  { %6814 = vmatprep.subr.bf16.mxu0 %v7196_v0 }
 0xf66   :  { %6816 = vmatpush3.bf16.msra.mxu0 %v7375_v47 }
 0xf67   :  { %6393 = vmatprep.subr.mxu0 %v7198_v1 }
 0xf6a   :  { %6394 = vmatpush3.msra.mxu0 %v7342_v32 }
 0xf6b   :  { %6817 = vmatprep.subr.bf16.mxu0 %v7196_v0 }
0x1034   :  { %v3754_v20 = vpop.f32.mrb[8].mxu0 }
0x1035   :  { %v3759_v21 = vrot.slane %v3754_v20, 3  ;;  %v6306_v24 = vpop.f32.mrb[9].mxu0 }
0x1037   :  { %v3761_v25 = vadd.f32 %v3759_v21, %v7484_v12  ;;  %3768 = vrot.lane.b32.xlu1 %v3759_v21, %s7199_s1 }
0x1039   :  { %v5452_v26 = vmul.f32 -1.442695, %v3761_v25 }
0x103b   :  { %7026 = vpow2.f32 %v5452_v26 }
0x1045   :  { %v7027_v27 = vpop.eup %7026 }
0x1046   :  { %v3765_v29 = vadd.f32 1.0, %v7027_v27 }
0x1048   :  { %7028 = vrcp.f32 %v3765_v29 }
0x1052   :  { %v7029_v30 = vpop.eup %7028 }
0x1053   :  { %v3778_v41 = vsub.f32 1.0, %v7029_v30 }
0x10a9   :  { %v3769_v31 = vpop.permute.xlu1 %3768 }
0x10aa   :  { %v3771_v33 = vmul.f32 %v7029_v30, %v3769_v31 }
0x10ac   :  { %3773 = vrot.lane.b32.xlu0 %v3771_v33, %s7199_s1 }
0x10b0   :  { %3785 = vrot.lane.b32.xlu0 %v3784_v35, %s7201_s25 }
0x111e   :  { %v3774_v36 = vpop.permute.xlu0 %3773 }
0x111f   :  { %v3776_v37 = vadd.f32 %v3774_v36, %v7484_v12 }
0x1121   :  { %7030 = vtanh.f32 %v3776_v37 }
0x1122   :  { %v3786_v39 = vpop.permute.xlu0 %3785 }
0x1123   :  { %v3788_v22 = vmul.f32 %v7029_v30, %v3786_v39  ;;  %v4891_v39 = vld [vmem:[#allocation8] sm:$0xff] }
0x112b   :  { %v7031_v38 = vpop.eup %7030 }
0x112c   :  { %3780 = vrot.lane.b32.xlu1 %v7031_v38, %s7200_s12 }
0x119e   :  { %v3781_v43 = vpop.permute.xlu1 %3780 }
0x119f   :  { %v3783_v44 = vmul.f32 %v3781_v43, %v3778_v41  ;;  %v4892_v41 = vld [vmem:[#allocation8 + $0x8] sm:$0xff]  ;;  %v4903_v43 = vand.u32 4294901760, %v4891_v39 }
0x11a1   :  { %v3789_v45 = vadd.f32 %v3788_v22, %v3783_v44  ;;  %v4906_v22 = vand.u32 4294901760, %v4892_v41 }
0x11a3   :  { %3791 = vrot.lane.b32.xlu1 %v3789_v45, %s7200_s12  ;;  %v7819_v48 = vsel %vm4880_vm8, %v7754_v8, %v3789_v45  ;;  %v7930_v44 = vpack.c.bf16 %v4906_v22, %v4903_v43  ;;  %v4893_v45 = vld [vmem:[#allocation8 + $0x10] sm:$0xff] }
0x1215   :  { %v3792_v49 = vpop.permute.xlu1 %3791 }
0x1216   :  { %v7822_v50 = vsel %vm1099_vm5, %v3792_v49, 1.0  ;;  %v7933_v49 = vsub.f32 %v4891_v39, %v4903_v43 }
0x1217   :  { %v3796_v51 = vrot.slane %v7822_v50, 5  ;;  %v4323_v11 = vrot.slane %v7822_v50, 7  ;;  %v4991_v50 = vsub.f32 %v4892_v41, %v4906_v22 }
0x1219   :  { %v3797_v53 = vsel %vm556_vm4, %v3796_v51, 0  ;;  %v4909_v51 = vand.u32 4294901760, %v4893_v45 }
0x121a   :  { %v3869_v54 = vand.u32 4294901760, %v3797_v53 }
0x121c   :  { %v3870_v57 = vsub.f32 %v3797_v53, %v3869_v54 }
0x121e   :  { %v3871_v58 = vand.u32 4294901760, %v3870_v57 }
0x1220   :  { %v3872_v59 = vsub.f32 %v3870_v57, %v3871_v58 }
0x1222   :  { %v3873_v60 = vand.u32 4294901760, %v3872_v59 }
0x1224   :  { %6318 = vmatmul.mubr.f32.vlgmr.msra.gmra.mrb[6].mxu1 %v3873_v60  ;;  %v4998_v60 = vsub.f32 %v4893_v45, %v4909_v51 }
0x1225   :  { %6783 = vmatpush3.bf16.msra.mxu1 %v7457_v4  ;;  %6330 = vmatprep.mubr.msk.f32.mxu1 %vm7197_vm0, %v7198_v1 }
0x1226   :  { %6784 = vmatprep.subr.bf16.mxu1 %v7196_v0 }
0x1229   :  { %6786 = vmatpush3.bf16.msra.mxu1 %v7462_v7 }
0x122a   :  { %6328 = vmatprep.subr.mxu1 %v7198_v1 }
0x122d   :  { %6329 = vmatpush3.msra.mxu1 %v7470_v9 }
0x122e   :  { %6331 = vmatmul.mubr.f32.vlgmr.msra.gmra.mrb[6].mxu1 %v3869_v54  ;;  %6787 = vmatprep.subr.bf16.mxu1 %v7196_v0 }
0x122f   :  { %6789 = vmatpush3.bf16.msra.mxu1 %v7324_v23  ;;  %6343 = vmatprep.mubr.msk.f32.mxu1 %vm7197_vm0, %v7198_v1 }
0x1230   :  { %6790 = vmatprep.subr.bf16.mxu1 %v7196_v0 }
0x1233   :  { %6792 = vmatpush3.bf16.msra.mxu1 %v7349_v34 }
0x1234   :  { %6341 = vmatprep.subr.mxu1 %v7198_v1 }
0x1237   :  { %6342 = vmatpush3.msra.mxu1 %v7362_v42 }
0x1238   :  { %6344 = vmatmul.mubr.f32.vlgmr.msra.gmra.mrb[6].mxu1 %v3870_v57  ;;  %6793 = vmatprep.subr.bf16.mxu1 %v7196_v0  ;;  %v4985_v57 = vand.u32 4294901760, %v7933_v49 }
0x1239   :  { %6795 = vmatpush3.bf16.msra.mxu1 %v7368_v46  ;;  %6356 = vmatprep.mubr.msk.f32.mxu1 %vm7197_vm0, %v7198_v1 }
0x123a   :  { %6796 = vmatprep.subr.bf16.mxu1 %v7196_v0 }
0x123d   :  { %6798 = vmatpush3.bf16.msra.mxu1 %v7375_v47 }
0x123e   :  { %6354 = vmatprep.subr.mxu1 %v7198_v1 }
0x1241   :  { %6355 = vmatpush3.msra.mxu1 %v7342_v32 }
0x1242   :  { %6357 = vmatmul.mubr.f32.vlgmr.msra.gmra.mrb[6].mxu1 %v3871_v58  ;;  %6799 = vmatprep.subr.bf16.mxu1 %v7196_v0  ;;  %v4992_v58 = vand.u32 4294901760, %v4991_v50 }
0x1243   :  { %6801 = vmatpush3.bf16.msra.mxu1 %v7392_v52  ;;  %6369 = vmatprep.mubr.msk.f32.mxu1 %vm7197_vm0, %v7198_v1 }
0x1244   :  { %6802 = vmatprep.subr.bf16.mxu1 %v7196_v0 }
0x1247   :  { %6804 = vmatpush3.bf16.msra.mxu1 %v7400_v55 }
0x1248   :  { %6367 = vmatprep.subr.mxu1 %v7198_v1 }
0x124b   :  { %6368 = vmatpush3.msra.mxu1 %v7409_v56 }
0x124c   :  { %6370 = vmatmul.mubr.f32.vlgmr.msra.gmra.mrb[6].mxu1 %v3869_v54  ;;  %6805 = vmatprep.subr.bf16.mxu1 %v7196_v0 }
0x124d   :  { %6807 = vmatpush3.bf16.msra.mxu1 %v7368_v46  ;;  %6382 = vmatprep.mubr.msk.f32.mxu1 %vm7197_vm0, %v7198_v1 }
0x124e   :  { %6808 = vmatprep.subr.bf16.mxu1 %v7196_v0 }
0x1251   :  { %6810 = vmatpush3.bf16.msra.mxu1 %v7375_v47 }
0x1252   :  { %6380 = vmatprep.subr.mxu1 %v7198_v1 }
0x1255   :  { %6381 = vmatpush3.msra.mxu1 %v7342_v32 }
0x1256   :  { %6383 = vmatmul.mubr.f32.vlgmr.msra.gmra.mrb[6].mxu1 %v3869_v54  ;;  %6847 = vmatprep.subr.bf16.mxu1 %v7196_v0 }
0x1257   :  { %6473 = vmatprep.mubr.msk.f32.mxu1 %vm7197_vm0, %v7198_v1  ;;  %6849 = vmatpush3.bf16.msra.mxu1 %v7930_v44 }
0x1258   :  { %6850 = vmatprep.subr.bf16.mxu1 %v7196_v0 }
0x1329   :  { %v4293_v61 = vpop.f32.mrb[6].mxu1 }
0x132a   :  { %v4298_v62 = vrot.slane %v4293_v61, 2  ;;  %v6384_v63 = vpop.f32.mrb[7].mxu1 }
0x132b   :  { %v4986_v63 = vsub.f32 %v7933_v49, %v4985_v57 }
0x132c   :  { %v4300_v2 = vadd.f32 %v4298_v62, %v7484_v12  ;;  %4307 = vrot.lane.b32.xlu0 %v4298_v62, %s7199_s1  ;;  %v4895_v62 = vld [vmem:[#allocation8 + $0x20] sm:$0x1] }
0x132e   :  { %v5453_v3 = vmul.f32 -1.442695, %v4300_v2  ;;  %v4993_v2 = vsub.f32 %v4991_v50, %v4992_v58 }
0x1330   :  { %7032 = vpow2.f32 %v5453_v3 }
0x133a   :  { %v7033_v5 = vpop.eup %7032 }
0x133b   :  { %v4304_v40 = vadd.f32 1.0, %v7033_v5 }
0x133d   :  { %7034 = vrcp.f32 %v4304_v40  ;;  %v4900_v40 = vsel %vm560_vm3, %v4895_v62, 0 }
0x1347   :  { %v7035_v6 = vpop.eup %7034 }
0x1348   :  { %v4317_v17 = vsub.f32 1.0, %v7035_v6 }
0x139e   :  { %v4308_v8 = vpop.permute.xlu0 %4307 }
0x139f   :  { %v4310_v10 = vmul.f32 %v7035_v6, %v4308_v8  ;;  %v7943_v8 = vand.u32 4294901760, %v4900_v40 }
0x13a1   :  { %4312 = vrot.lane.b32.xlu1 %v4310_v10, %s7199_s1  ;;  %v4987_v10 = vand.u32 4294901760, %v4986_v63 }
0x13a5   :  { %4324 = vrot.lane.b32.xlu1 %v4323_v11, %s7201_s25  ;;  %v4994_v11 = vand.u32 4294901760, %v4993_v2 }
0x1413   :  { %v4313_v13 = vpop.permute.xlu1 %4312 }
0x1414   :  { %v4315_v14 = vadd.f32 %v4313_v13, %v7484_v12  ;;  %v4999_v13 = vand.u32 4294901760, %v4998_v60 }
0x1416   :  { %7036 = vtanh.f32 %v4315_v14 }
0x1417   :  { %v4325_v16 = vpop.permute.xlu1 %4324 }
0x1418   :  { %v4327_v19 = vmul.f32 %v7035_v6, %v4325_v16  ;;  %v6854_v16 = vpack.c.bf16 %v4994_v11, %v4987_v10 }
0x1420   :  { %v7037_v15 = vpop.eup %7036 }
0x1421   :  { %4319 = vrot.lane.b32.xlu0 %v7037_v15, %s7200_s12 }
0x1493   :  { %v4320_v18 = vpop.permute.xlu0 %4319 }
0x1494   :  { %v4322_v20 = vmul.f32 %v4320_v18, %v4317_v17  ;;  %v5000_v17 = vsub.f32 %v4998_v60, %v4999_v13 }
0x1496   :  { %v4328_v21 = vadd.f32 %v4327_v19, %v4322_v20  ;;  %v5001_v20 = vand.u32 4294901760, %v5000_v17 }
0x1498   :  { %4330 = vrot.lane.b32.xlu0 %v4328_v21, %s7200_s12  ;;  %v7877_v24 = vsel %vm4882_vm9, %v7819_v48, %v4328_v21  ;;  %v4894_v48 = vld [vmem:[#allocation8 + $0x18] sm:$0xff] }
0x1499   :  { %v4912_v53 = vand.u32 4294901760, %v4894_v48 }
0x149b   :  { %v7936_v54 = vpack.c.bf16 %v4912_v53, %v4909_v51  ;;  %v5005_v61 = vsub.f32 %v4894_v48, %v4912_v53 }
0x149d   :  { %6852 = vmatpush3.bf16.msra.mxu1 %v7936_v54  ;;  %v5006_v14 = vand.u32 4294901760, %v5005_v61 }
0x149e   :  { %6471 = vmatprep.subr.mxu1 %v7198_v1 }
0x149f   :  { %v5007_v18 = vsub.f32 %v5005_v61, %v5006_v14 }
0x14a1   :  { %6472 = vmatpush3.msra.mxu1 %v7943_v8  ;;  %v5008_v21 = vand.u32 4294901760, %v5007_v18 }
0x14a2   :  { %6853 = vmatprep.subr.bf16.mxu1 %v7196_v0 }
0x150a   :  { %v4331_v25 = vpop.permute.xlu0 %4330 }
0x150b   :  { %v7880_v26 = vsel %vm1099_vm5, %v4331_v25, 1.0  ;;  %v6857_v25 = vpack.c.bf16 %v5008_v21, %v5001_v20 }
0x150c   :  { %v4335_v27 = vrot.slane %v7880_v26, 6 }
0x150e   :  { %v4336_v29 = vsel %vm556_vm4, %v4335_v27, 0  ;;  %v6863_v27 = vpack.c.bf16 %v5005_v61, %v4998_v60 }
0x150f   :  { %v4408_v30 = vand.u32 4294901760, %v4336_v29 }
0x1511   :  { %v4409_v31 = vsub.f32 %v4336_v29, %v4408_v30  ;;  %v6872_v29 = vpack.c.bf16 %v4992_v58, %v4985_v57 }
0x1513   :  { %v4410_v33 = vand.u32 4294901760, %v4409_v31 }
0x1515   :  { %v4411_v35 = vsub.f32 %v4409_v31, %v4410_v33 }
0x1517   :  { %v4412_v36 = vand.u32 4294901760, %v4411_v35 }
0x1519   :  { %6396 = vmatmul.mubr.f32.vlgmr.msra.gmra.mrb[10].mxu0 %v4412_v36 }
0x151a   :  { %6819 = vmatpush3.bf16.msra.mxu0 %v7457_v4  ;;  %6408 = vmatprep.mubr.msk.f32.mxu0 %vm7197_vm0, %v7198_v1 }
0x151b   :  { %6820 = vmatprep.subr.bf16.mxu0 %v7196_v0 }
0x151e   :  { %6822 = vmatpush3.bf16.msra.mxu0 %v7462_v7 }
0x151f   :  { %6406 = vmatprep.subr.mxu0 %v7198_v1 }
0x1522   :  { %6407 = vmatpush3.msra.mxu0 %v7470_v9 }
0x1523   :  { %6409 = vmatmul.mubr.f32.vlgmr.msra.gmra.mrb[10].mxu0 %v4408_v30  ;;  %6823 = vmatprep.subr.bf16.mxu0 %v7196_v0 }
0x1524   :  { %6825 = vmatpush3.bf16.msra.mxu0 %v7324_v23  ;;  %6421 = vmatprep.mubr.msk.f32.mxu0 %vm7197_vm0, %v7198_v1 }
0x1525   :  { %6826 = vmatprep.subr.bf16.mxu0 %v7196_v0 }
0x1528   :  { %6828 = vmatpush3.bf16.msra.mxu0 %v7349_v34 }
0x1529   :  { %6419 = vmatprep.subr.mxu0 %v7198_v1 }
0x152c   :  { %6420 = vmatpush3.msra.mxu0 %v7362_v42 }
0x152d   :  { %6422 = vmatmul.mubr.f32.vlgmr.msra.gmra.mrb[10].mxu0 %v4409_v31  ;;  %6829 = vmatprep.subr.bf16.mxu0 %v7196_v0 }
0x152e   :  { %6831 = vmatpush3.bf16.msra.mxu0 %v7368_v46  ;;  %6434 = vmatprep.mubr.msk.f32.mxu0 %vm7197_vm0, %v7198_v1 }
0x152f   :  { %6832 = vmatprep.subr.bf16.mxu0 %v7196_v0 }
0x1532   :  { %6834 = vmatpush3.bf16.msra.mxu0 %v7375_v47 }
0x1533   :  { %6432 = vmatprep.subr.mxu0 %v7198_v1 }
0x1536   :  { %6433 = vmatpush3.msra.mxu0 %v7342_v32 }
0x1537   :  { %6435 = vmatmul.mubr.f32.vlgmr.msra.gmra.mrb[10].mxu0 %v4410_v33  ;;  %6835 = vmatprep.subr.bf16.mxu0 %v7196_v0 }
0x1538   :  { %6837 = vmatpush3.bf16.msra.mxu0 %v7392_v52  ;;  %6447 = vmatprep.mubr.msk.f32.mxu0 %vm7197_vm0, %v7198_v1 }
0x1539   :  { %6838 = vmatprep.subr.bf16.mxu0 %v7196_v0 }
0x153c   :  { %6840 = vmatpush3.bf16.msra.mxu0 %v7400_v55 }
0x153d   :  { %6445 = vmatprep.subr.mxu0 %v7198_v1 }
0x1540   :  { %6446 = vmatpush3.msra.mxu0 %v7409_v56 }
0x1541   :  { %6448 = vmatmul.mubr.f32.vlgmr.msra.gmra.mrb[10].mxu0 %v4408_v30  ;;  %6841 = vmatprep.subr.bf16.mxu0 %v7196_v0 }
0x1542   :  { %6843 = vmatpush3.bf16.msra.mxu0 %v7368_v46  ;;  %6460 = vmatprep.mubr.msk.f32.mxu0 %vm7197_vm0, %v7198_v1 }
0x1543   :  { %6844 = vmatprep.subr.bf16.mxu0 %v7196_v0 }
0x1546   :  { %6846 = vmatpush3.bf16.msra.mxu0 %v7375_v47 }
0x1547   :  { %6458 = vmatprep.subr.mxu0 %v7198_v1 }
0x154a   :  { %6459 = vmatpush3.msra.mxu0 %v7342_v32  ;;  %v4862_v32 = vrot.slane %v7880_v26, 7  ;;  %v6860_v26 = vpack.c.bf16 %v4991_v50, %v7933_v49 }
0x154b   :  { %6461 = vmatmul.mubr.f32.vlgmr.msra.gmra.mrb[10].mxu0 %v4408_v30  ;;  %v6875_v30 = vpack.c.bf16 %v5006_v14, %v4999_v13 }
0x161e   :  { %v4832_v23 = vpop.f32.mrb[10].mxu0 }
0x161f   :  { %v4837_v34 = vrot.slane %v4832_v23, 1  ;;  %v6462_v42 = vpop.f32.mrb[11].mxu0 }
0x1621   :  { %v4839_v52 = vadd.f32 %v4837_v34, %v7484_v12  ;;  %4846 = vrot.lane.b32.xlu1 %v4837_v34, %s7199_s1  ;;  %v5012_v34 = vsub.f32 %v4900_v40, %v7943_v8 }
0x1623   :  { %v5454_v46 = vmul.f32 -1.442695, %v4839_v52  ;;  %v5013_v52 = vand.u32 4294901760, %v5012_v34 }
0x1625   :  { %7038 = vpow2.f32 %v5454_v46 }
0x162f   :  { %v7039_v55 = vpop.eup %7038 }
0x1630   :  { %v4843_v56 = vadd.f32 1.0, %v7039_v55  ;;  %v5014_v55 = vsub.f32 %v5012_v34, %v5013_v52 }
0x1632   :  { %7040 = vrcp.f32 %v4843_v56  ;;  %v5015_v56 = vand.u32 4294901760, %v5014_v55 }
0x163c   :  { %v7041_v4 = vpop.eup %7040 }
0x163d   :  { %v4856_v59 = vsub.f32 1.0, %v7041_v4 }
0x1693   :  { %v4847_v7 = vpop.permute.xlu1 %4846 }
0x1694   :  { %v4849_v47 = vmul.f32 %v7041_v4, %v4847_v7  ;;  %v5400_v7 = vld [vmem:[%s8021_s5] sm:$0xff]  ;;  %s5432_s5 = sshll.u32 %s7202_s29, 4  ;;  %s5433_s5 = int_to_ptr.vmem [resolvable:$true] %s5432_s5 }
0x1695   :  { %s7136_s30 = scalar_lea.vmem %s5433_s5, 16  ;;  %s7140_s8 = scalar_lea.vmem %s5433_s5, 32 }
0x1696   :  { %4851 = vrot.lane.b32.xlu0 %v4849_v47, %s7199_s1  ;;  %p7137_p4 = scmp.ne.s32.totalorder %s5433_s5, %s7136_s30  ;;  %p7141_p5 = scmp.lt.s32.totalorder %s5433_s5, %s5433_s5 }
0x1697   :  { %p7142_p6 = scmp.lt.s32.totalorder %s7140_s8, %s7136_s30 }
0x1699   :  { %p7143_p7 = por %p7142_p6, %p7141_p5 }
0x169a   :  { %4863 = vrot.lane.b32.xlu0 %v4862_v32, %s7201_s25 }
0x169b   :  { %p7144_p8 = pnand %p7143_p7, %p7137_p4 }
0x1708   :  { %v4852_v9 = vpop.permute.xlu0 %4851 }
0x1709   :  { %v4854_v37 = vadd.f32 %v4852_v9, %v7484_v12 }
0x170b   :  { %7042 = vtanh.f32 %v4854_v37 }
0x170c   :  { %v4864_v12 = vpop.permute.xlu0 %4863 }
0x170d   :  { %v4866_v3 = vmul.f32 %v7041_v4, %v4864_v12  ;;  %v5403_v4 = vand.u32 127, %v1086_v28 }
0x170f   :  { %vm5404_vm11 = vcmp.lt.s32.totalorder %v5403_v4, 30 }
0x1715   :  { %v7043_v38 = vpop.eup %7042 }
0x1716   :  { %4858 = vrot.lane.b32.xlu1 %v7043_v38, %s7200_s12 }
0x1788   :  { %v4859_v5 = vpop.permute.xlu1 %4858 }
0x1789   :  { %v4861_v6 = vmul.f32 %v4859_v5, %v4856_v59 }
0x178b   :  { %v7945_v15 = vadd.f32 %v4866_v3, %v4861_v6 }
0x178d   :  { %v4885_v19 = vsel %vm4884_vm10, %v7877_v24, %v7945_v15 }
0x178e   :  { %4887 = vrot.lane.b32.xlu1 %v4885_v19, %s7200_s12 }
0x1800   :  { %v4888_v31 = vpop.permute.xlu1 %4887 }
0x1801   :  { %v4890_v33 = vsel %vm1099_vm5, %v4888_v31, 1.0 }
0x1802   :  { %v4897_v35 = vsel %vm556_vm4, %v4890_v33, 0 }
0x1803   :  { %v4972_v36 = vand.u32 4294901760, %v4897_v35 }
0x1805   :  { %v4973_v23 = vsub.f32 %v4897_v35, %v4972_v36 }
0x1807   :  { %v4974_v24 = vand.u32 4294901760, %v4973_v23 }
0x1809   :  { %v4975_v42 = vsub.f32 %v4973_v23, %v4974_v24 }
0x180b   :  { %v4976_v46 = vand.u32 4294901760, %v4975_v42 }
0x180d   :  { %6474 = vmatmul.mubr.f32.vlgmr.msra.gmra.mrb[8].mxu1 %v4976_v46 }
0x180e   :  { %6855 = vmatpush3.bf16.msra.mxu1 %v6854_v16  ;;  %6486 = vmatprep.mubr.msk.f32.mxu1 %vm7197_vm0, %v7198_v1 }
0x180f   :  { %6856 = vmatprep.subr.bf16.mxu1 %v7196_v0 }
0x1812   :  { %6858 = vmatpush3.bf16.msra.mxu1 %v6857_v25 }
0x1813   :  { %6484 = vmatprep.subr.mxu1 %v7198_v1 }
0x1816   :  { %6485 = vmatpush3.msra.mxu1 %v5015_v56 }
0x1817   :  { %6487 = vmatmul.mubr.f32.vlgmr.msra.gmra.mrb[8].mxu1 %v4972_v36  ;;  %6859 = vmatprep.subr.bf16.mxu1 %v7196_v0 }
0x1818   :  { %6861 = vmatpush3.bf16.msra.mxu1 %v6860_v26  ;;  %6499 = vmatprep.mubr.msk.f32.mxu1 %vm7197_vm0, %v7198_v1 }
0x1819   :  { %6862 = vmatprep.subr.bf16.mxu1 %v7196_v0 }
0x181c   :  { %6864 = vmatpush3.bf16.msra.mxu1 %v6863_v27 }
0x181d   :  { %6497 = vmatprep.subr.mxu1 %v7198_v1 }
0x1820   :  { %6498 = vmatpush3.msra.mxu1 %v5012_v34 }
0x1821   :  { %6500 = vmatmul.mubr.f32.vlgmr.msra.gmra.mrb[8].mxu1 %v4973_v23  ;;  %6865 = vmatprep.subr.bf16.mxu1 %v7196_v0 }
0x1822   :  { %6867 = vmatpush3.bf16.msra.mxu1 %v7930_v44  ;;  %6512 = vmatprep.mubr.msk.f32.mxu1 %vm7197_vm0, %v7198_v1 }
0x1823   :  { %6868 = vmatprep.subr.bf16.mxu1 %v7196_v0 }
0x1826   :  { %6870 = vmatpush3.bf16.msra.mxu1 %v7936_v54 }
0x1827   :  { %6510 = vmatprep.subr.mxu1 %v7198_v1 }
0x182a   :  { %6511 = vmatpush3.msra.mxu1 %v7943_v8 }
0x182b   :  { %6513 = vmatmul.mubr.f32.vlgmr.msra.gmra.mrb[8].mxu1 %v4974_v24  ;;  %6871 = vmatprep.subr.bf16.mxu1 %v7196_v0 }
0x182c   :  { %6873 = vmatpush3.bf16.msra.mxu1 %v6872_v29  ;;  %6525 = vmatprep.mubr.msk.f32.mxu1 %vm7197_vm0, %v7198_v1 }
0x182d   :  { %6874 = vmatprep.subr.bf16.mxu1 %v7196_v0 }
0x1830   :  { %6876 = vmatpush3.bf16.msra.mxu1 %v6875_v30 }
0x1831   :  { %6523 = vmatprep.subr.mxu1 %v7198_v1 }
0x1834   :  { %6524 = vmatpush3.msra.mxu1 %v5013_v52 }
0x1835   :  { %6526 = vmatmul.mubr.f32.vlgmr.msra.gmra.mrb[8].mxu1 %v4972_v36  ;;  %6877 = vmatprep.subr.bf16.mxu1 %v7196_v0 }
0x1836   :  { %6879 = vmatpush3.bf16.msra.mxu1 %v7930_v44  ;;  %6538 = vmatprep.mubr.msk.f32.mxu1 %vm7197_vm0, %v7198_v1 }
0x1837   :  { %6880 = vmatprep.subr.bf16.mxu1 %v7196_v0 }
0x183a   :  { %6882 = vmatpush3.bf16.msra.mxu1 %v7936_v54 }
0x183b   :  { %6536 = vmatprep.subr.mxu1 %v7198_v1 }
0x183e   :  { %6537 = vmatpush3.msra.mxu1 %v7943_v8 }
0x183f   :  { %6539 = vmatmul.mubr.f32.vlgmr.msra.gmra.mrb[8].mxu1 %v4972_v36 }
0x1912   :  { %v5396_v47 = vpop.f32.mrb[8].mxu1 }
0x1913   :  { %v5401_v32 = vmul.f32 %v5400_v7, %v5396_v47  ;;  %v6540_v9 = vpop.f32.mrb[9].mxu1 }
0x1915   :  { %v5405_v37 = vsel %vm5404_vm11, %v5401_v32, -1e+30 }
0x1916   :  { %5406 = vmax.xlane.f32.xlu0 %v5405_v37 }
0x192c   :  { %4869 = vrot.lane.b32.xlu0 %v7945_v15, %s7200_s12 }
0x19a3   :  { %v5407_v0 = vpop.xlane.xlu0 %5406 }
0x19a4   :  { %v5408_v1 = vsub.f32 %v5405_v37, %v5407_v0 }
0x19a6   :  { %v5409_v38 = vmul.f32 1.442695, %v5408_v1 }
0x19a7   :  { %v4870_v39 = vpop.permute.xlu0 %4869 }
0x19a8   :  { %7044 = vpow2.f32 %v5409_v38  ;;  %4873 = vst.msk [vmem:[#allocation11 - $0x7] sm:$0x80] %vm4872_vm12, %v4870_v39 }
0x19b2   :  { %v7045_v28 = vpop.eup %7044 }
0x19b3   :  { %5411 = vadd.xlane.f32.xlu1 %v7045_v28 }
0x19b4   :  { %7147 = shalt.err (!%p7144_p8)
}
0x19b5   :  { %s7148_s13 = scalar_lea.hbm %s8023_s7, 16 }
0x19b6   :  { %p7149_p9 = scmp.ne.s32.totalorder %s8023_s7, %s7148_s13  ;;  %p7152_p10 = scmp.lt.u32.totalorder %s7148_s13, %s8023_s7 }
0x19b8   :  { %p7154_p11 = pnand %p7152_p10, %p7149_p9 }
0x19ba   :  { %7157 = shalt.err (!%p7154_p11)
}
0x19bb   :  { %5435 = dma.vmem_to_hbm [thread:$0]  %s5433_s5, 16, %s8023_s7, [#allocation12]  }
0x19bc   :  { %s7203_s20 = smov [#allocation10]  }
0x19bd   :  { %s5422_s21 = sshll.u32 %s7203_s20, 4  ;;  %s5423_s21 = int_to_ptr.vmem [resolvable:$true] %s5422_s21 }
0x19be   :  { %s7158_s22 = scalar_lea.vmem %s5423_s21, 128  ;;  %p7163_p13 = scmp.lt.s32.totalorder %s5423_s21, %s5423_s21 }
0x19bf   :  { %p7159_p12 = scmp.ne.s32.totalorder %s5423_s21, %s7158_s22  ;;  %p7164_p0 = scmp.lt.s32.totalorder %s7158_s22, %s7158_s22 }
0x19c1   :  { %p7165_p1 = por %p7164_p0, %p7163_p13 }
0x19c3   :  { %p7166_p2 = pnand %p7165_p1, %p7159_p12 }
0x1a40   :  { %v5412_v41 = vpop.xlane.xlu1 %5411 }
0x1a41   :  { %7046 = vrcp.f32 %v5412_v41 }
0x1a4b   :  { %v7047_v43 = vpop.eup %7046 }
0x1a4c   :  { %v5414_v22 = vmul.f32 %v7047_v43, %v7045_v28 }
0x1a4e   :  { %5415 = vst [vmem:[#allocation10] sm:$0xff] %v5414_v22 }
0x1a4f   :  { %7169 = shalt.err (!%p7166_p2)
}
0x1a50   :  { %s7170_s26 = scalar_lea.hbm %s8022_s6, 128 }
0x1a51   :  { %p7171_p3 = scmp.ne.s32.totalorder %s8022_s6, %s7170_s26  ;;  %p7174_p4 = scmp.lt.u32.totalorder %s7170_s26, %s8022_s6 }
0x1a53   :  { %p7176_p5 = pnand %p7174_p4, %p7171_p3 }
0x1a55   :  { %7179 = shalt.err (!%p7176_p5)
}
0x1a56   :  { %5425 = dma.vmem_to_hbm [thread:$0]  %s5423_s21, 128, %s8022_s6, [#allocation4]  }
0x1a57   :  { %7186 = dma.done.wait [#allocation4], 128  }
0x1a58   :  { %7187 = vsyncadd [#allocation4], 4294967168 }
0x1a59   :  { %7188 = dma.done.wait [#allocation12], 16  }
0x1a5a   :  { %7189 = vsyncadd [#allocation12], 4294967280 }
0x1a5b   :  { %5442 = vsyncpa [#allocation3], 1 }
0x1a5c   :  { %5443 = vsyncpa [#allocation6], 1 }
0x1a5d   :  { %5444 = vsyncpa [#allocation9], 1 }
0x1a5e   :  { %5445 = vsyncpa [#allocation4], 1 }
0x1a5f   :  { %5446 = vsyncpa [#allocation12], 1 }

</bundles_post_ra>
